<compile_context>
chip_gen: v7x
topology: tpu7x:2x2x1
jax: 0.10.0
libtpu: 0.0.40
codegen_flags: <defaults>
</compile_context>

<pallas_src>
import functools
import math

import jax
import jax.numpy as jnp
from jax.experimental import pallas as pl
from jax.experimental.pallas import tpu as pltpu


def _tebn_layer_kernel(x_ref, w_ref, gamma_ref, beta_ref, p_ref, o_ref,
                       *, group, hw, n_frames, count, eps):
    """Fused Conv2d (as GEMM) + BatchNorm2d(training) + TEBN p_t scaling.

    grid = (n_steps,): each step convolves `group` flattened frames with a single
    MXU call and scatters the per-frame results into the VMEM-resident output
    block; the last step finalizes BN statistics and normalizes in place.
    """
    step = pl.program_id(0)
    last = pl.num_programs(0) - 1
    base = step * group

    # ---- every step: conv-as-GEMM, ONE MXU call for the whole frame group ----
    # (C_out, K_pad) @ (K_pad, group*HW) -> (C_out, group*HW), f32 accumulate.
    # Conv bias is folded in via a ones-row / bias-column (MXU-free bias add).
    y = jnp.dot(w_ref[...], x_ref[...], preferred_element_type=jnp.float32)

    # Scatter lane-aligned (HW is a multiple of 128) per-frame segments into the
    # resident output block; HBM writeback happens once, after the last step.
    for g in range(group):
        o_ref[base + g] = y[:, g * hw:(g + 1) * hw]

    # ---- last step only: BN stats (two-pass), normalize, TEBN p_t scale ----
    @pl.when(step == last)
    def _epilogue():
        inv_n = 1.0 / count
        y_all = o_ref[...]                                   # (N, C_out, HW) f32, in VMEM

        # per-channel mean: lane reduction + tiny static combine across frames
        row = jnp.sum(y_all, axis=-1, keepdims=True)         # (N, C_out, 1)
        mean = row[0]
        for n in range(1, n_frames):
            mean = mean + row[n]
        mean = mean * inv_n                                   # (C_out, 1)

        # two-pass variance from (y - mean)^2: numerically safe vs E[y^2]-mean^2
        diff = y_all - mean[None]                             # (N, C_out, HW)
        sq = jnp.sum(diff * diff, axis=-1, keepdims=True)     # (N, C_out, 1)
        var = sq[0]
        for n in range(1, n_frames):
            var = var + sq[n]
        var = var * inv_n                                     # (C_out, 1)

        scale = gamma_ref[...] * jax.lax.rsqrt(var + eps)     # (C_out, 1)
        ps = p_ref[...]                                       # (N, 1, 1) TEBN per-frame scale
        # y_bn = diff*scale + beta ; y_out = y_bn * p  -> one vectorized pass
        o_ref[...] = (diff * (scale[None] * ps)
                      + beta_ref[...][None] * ps).astype(o_ref.dtype)


def _pick_group(n, hw, k_pad, budget_bytes=4 << 20):
    """Largest divisor of n whose double-buffered bf16 patch block fits `budget_bytes`
    and whose lane extent (g*hw) is 128-aligned (or g == n, i.e. full array)."""
    valid = [g for g in range(1, n + 1)
             if n % g == 0 and (g == n or (g * hw) % 128 == 0)]
    fitting = [g for g in valid if 2 * 2 * k_pad * g * hw <= budget_bytes]
    return max(fitting) if fitting else min(valid)


@functools.partial(jax.jit, static_argnames=("stride", "padding", "eps"))
def tebn_layer_forward(x_seq, weight, bias, gamma, beta, p,
                       *, stride, padding, eps=1e-5):
    """TEBNLayer forward. x_seq: [B, T, C_in, H, W]; p: per-time-step TEBN scale (len T)."""
    B, T, C_in, H, W = x_seq.shape
    C_out, _, KH, KW = weight.shape
    N = B * T
    H_out = (H + 2 * padding - KH) // stride + 1
    W_out = (W + 2 * padding - KW) // stride + 1
    HW = H_out * W_out
    K = KH * KW * C_in
    K_pad = -(-(K + 1) // 16) * 16          # +1 bias row, padded to a bf16 sublane tile

    # ---- im2col^T glue (plain XLA), emitted directly in the kernel's layout ----
    # TODO(synk): for large H*W move patch extraction in-kernel (halo-tiled NCHW DMA)
    # to avoid the KH*KW read amplification; at these shapes it is <1 MiB total.
    x = x_seq.reshape(N, C_in, H, W)
    x_pad = jnp.pad(x, ((0, 0), (0, 0), (padding, padding), (padding, padding)))
    taps = []
    for kh in range(KH):
        for kw in range(KW):
            taps.append(x_pad[:, :,
                              kh:kh + (H_out - 1) * stride + 1:stride,
                              kw:kw + (W_out - 1) * stride + 1:stride])
    # k-order = (kh, kw, c_in); columns flattened as (frame, spatial) -> lane-dense.
    x_col = jnp.stack(taps, axis=1).reshape(N, K, HW)
    x_col = x_col.transpose(1, 0, 2).reshape(K, N * HW)
    x_col_t = jnp.concatenate(
        [x_col,
         jnp.ones((1, N * HW), x_col.dtype),                       # bias row
         jnp.zeros((K_pad - K - 1, N * HW), x_col.dtype)],          # tile padding
        axis=0).astype(jnp.bfloat16)

    # PyTorch weight [C_out, C_in, KH, KW] -> [C_out, K_pad] with matching k-order,
    # bias folded as column K, zero padding to K_pad.
    w_flat = weight.transpose(0, 2, 3, 1).reshape(C_out, K)
    w_aug = jnp.concatenate(
        [w_flat, bias.reshape(C_out, 1),
         jnp.zeros((C_out, K_pad - K - 1), w_flat.dtype)],
        axis=1).astype(jnp.bfloat16)

    gamma_col = gamma.reshape(C_out, 1).astype(jnp.float32)
    beta_col = beta.reshape(C_out, 1).astype(jnp.float32)
    # One TEBN scalar per flattened frame (n = b*T + t  ->  p[n % T]).
    p_img = jnp.tile(p.reshape(T), (B,)).reshape(N, 1, 1).astype(jnp.float32)

    group = _pick_group(N, HW, K_pad)       # frames per grid step (divides N exactly)
    n_steps = N // group
    count = float(N * HW)                    # BN normalization count per channel

    # TODO(synk): for real CIFAR10-DVS shapes (N*C_out*HW*4 approaching the v7x 64 MiB
    # VMEM) the resident output block needs a bf16 / HBM-streamed fallback path.
    x_block_bytes = K_pad * group * HW * 2
    out_bytes = N * C_out * HW * 4
    vmem_limit = int(min(max(2 * x_block_bytes + 8 * out_bytes + (4 << 20), 32 << 20),
                         48 << 20))

    out = pl.pallas_call(
        functools.partial(_tebn_layer_kernel, group=group, hw=HW,
                          n_frames=N, count=count, eps=eps),
        out_shape=jax.ShapeDtypeStruct((N, C_out, HW), jnp.float32),
        grid_spec=pltpu.PrefetchScalarGridSpec(
            num_scalar_prefetch=0,
            grid=(n_steps,),
            in_specs=[
                # conv patches: one lane-dense slab per step
                pl.BlockSpec((K_pad, group * HW), lambda s: (0, s)),
                pl.BlockSpec((C_out, K_pad), lambda s: (0, 0)),      # W^T (+bias), resident
                pl.BlockSpec((C_out, 1), lambda s: (0, 0)),          # BN gamma
                pl.BlockSpec((C_out, 1), lambda s: (0, 0)),          # BN beta
                pl.BlockSpec((N, 1, 1), lambda s: (0, 0, 0)),        # TEBN p per frame
            ],
            # Full output resident in VMEM across the grid; written back once.
            out_specs=pl.BlockSpec((N, C_out, HW), lambda s: (0, 0, 0)),
        ),
        compiler_params=pltpu.CompilerParams(
            # Sequential on purpose: the epilogue needs statistics over all steps.
            dimension_semantics=("arbitrary",),
            vmem_limit_bytes=vmem_limit),
    )(x_col_t, w_aug, gamma_col, beta_col, p_img)

    # [N, C_out, HW] is already flattened NCHW -> pure-view reshape, no transpose.
    # TODO(synk): BatchNorm2d running_mean/running_var (training-mode state) not returned.
    return out.reshape(B, T, C_out, H_out, W_out)


def _reference(x_seq, weight, bias, gamma, beta, p, stride, padding, eps=1e-5):
    B, T, C_in, H, W = x_seq.shape
    x = x_seq.reshape(B * T, C_in, H, W)
    y = jax.lax.conv_general_dilated(
        x, weight, (stride, stride),
        [(padding, padding), (padding, padding)],
        dimension_numbers=("NCHW", "OIHW", "NCHW"),
        precision=jax.lax.Precision.HIGHEST)
    y = y + bias[None, :, None, None]
    mean = y.mean(axis=(0, 2, 3), keepdims=True)
    var = y.var(axis=(0, 2, 3), keepdims=True)
    y = gamma[None, :, None, None] * (y - mean) / jnp.sqrt(var + eps) \
        + beta[None, :, None, None]
    y = y.reshape(B, T, *y.shape[1:])
    return y * p.reshape(1, T, 1, 1, 1)


if __name__ == "__main__":
    # TEBNLayer(in_plane=4, out_plane=8, kernel_size=3, stride=1, padding=1)
    # x: [B, T, C_in, H, W]; TEBN's p parameter has 10 entries -> T = 10.
    B, T, C_in, C_out, H, W = 2, 10, 4, 8, 16, 16
    KSIZE, STRIDE, PAD = 3, 1, 1

    key = jax.random.PRNGKey(0)
    k_x, k_w, k_b, k_g, k_bt = jax.random.split(key, 5)

    x_seq = jax.random.normal(k_x, (B, T, C_in, H, W), dtype=jnp.float32)

    fan_in = C_in * KSIZE * KSIZE
    weight = jax.random.normal(k_w, (C_out, C_in, KSIZE, KSIZE),
                               jnp.float32) / math.sqrt(fan_in)
    bias = 0.1 * jax.random.normal(k_b, (C_out,), jnp.float32)
    gamma = 1.0 + 0.1 * jax.random.normal(k_g, (C_out,), jnp.float32)
    beta = 0.1 * jax.random.normal(k_bt, (C_out,), jnp.float32)
    # nn.Parameter(torch.ones(10,1,1,1,1)) at init; use non-trivial values so the
    # per-time-step scaling path is actually exercised.
    p = jnp.linspace(0.5, 1.5, T, dtype=jnp.float32).reshape(T, 1, 1, 1, 1)

    out = tebn_layer_forward(x_seq, weight, bias, gamma, beta, p,
                             stride=STRIDE, padding=PAD)
    out = jax.block_until_ready(out)

    ref = _reference(x_seq, weight, bias, gamma, beta, p, STRIDE, PAD)
    assert out.shape == (B, T, C_out, H, W), out.shape
    # bf16 MXU inputs (f32 accumulate) vs an f32 HIGHEST-precision reference.
    assert jnp.allclose(out, ref, atol=5e-2, rtol=5e-2), \
        float(jnp.max(jnp.abs(out - ref)))

    print("KERNEL_OK")
</pallas_src>

<mosaic_0001>
module attributes {stable_mosaic.version = 11 : i64} {
  func.func @_tebn_layer_kernel(%arg0: i32, %arg1: memref<48x5120xbf16, #tpu.memory_space<vmem>>, %arg2: memref<8x48xbf16, #tpu.memory_space<vmem>>, %arg3: memref<8x1xf32, #tpu.memory_space<vmem>>, %arg4: memref<8x1xf32, #tpu.memory_space<vmem>>, %arg5: memref<20x1x1xf32, #tpu.memory_space<vmem>>, %arg6: memref<20x8x256xf32, #tpu.memory_space<vmem>>) attributes {dimension_semantics = [#tpu.dimension_semantics<arbitrary>], iteration_bounds = array<i64: 1>, scalar_prefetch = 0 : i64, scratch_operands = 0 : i64, tpu.core_type = #tpu.core_type<tc>, window_params = [{transform_indices = @transform_0, window_bounds = array<i64: 48, 5120>}, {pipeline_mode = #tpu.pipeline_mode<synchronous>, transform_indices = @transform_1, window_bounds = array<i64: 8, 48>}, {pipeline_mode = #tpu.pipeline_mode<synchronous>, transform_indices = @transform_2, window_bounds = array<i64: 8, 1>}, {pipeline_mode = #tpu.pipeline_mode<synchronous>, transform_indices = @transform_3, window_bounds = array<i64: 8, 1>}, {pipeline_mode = #tpu.pipeline_mode<synchronous>, transform_indices = @transform_4, window_bounds = array<i64: 20, 1, 1>}, {pipeline_mode = #tpu.pipeline_mode<synchronous>, transform_indices = @transform_5, window_bounds = array<i64: 20, 8, 256>}]} {
    %c20_i32 = arith.constant 20 : i32
    %0 = arith.muli %arg0, %c20_i32 : i32
    %c0 = arith.constant 0 : index
    %c0_0 = arith.constant 0 : index
    %1 = vector.load %arg2[%c0, %c0_0] : memref<8x48xbf16, #tpu.memory_space<vmem>>, vector<8x48xbf16>
    %c0_1 = arith.constant 0 : index
    %c0_2 = arith.constant 0 : index
    %2 = vector.load %arg1[%c0_1, %c0_2] : memref<48x5120xbf16, #tpu.memory_space<vmem>>, vector<48x5120xbf16>
    %cst = arith.constant dense<0.000000e+00> : vector<8x5120xf32>
    %3 = tpu.matmul %1, %2, %cst {dimension_numbers = #tpu.dot_dimension_numbers<[1], [0], [0], [1], [0, 0, 1, 1], [], []>} : vector<8x48xbf16>, vector<48x5120xbf16>, vector<8x5120xf32> -> vector<8x5120xf32>
    %4 = vector.extract_strided_slice %3 {offsets = [0, 0], sizes = [8, 256], strides = [1, 1]} : vector<8x5120xf32> to vector<8x256xf32>
    %c0_i32 = arith.constant 0 : i32
    %5 = arith.addi %0, %c0_i32 : i32
    %6 = arith.index_cast %5 : i32 to index
    %c0_3 = arith.constant 0 : index
    %c0_4 = arith.constant 0 : index
    %7 = vector.load %arg6[%6, %c0_3, %c0_4] : memref<20x8x256xf32, #tpu.memory_space<vmem>>, vector<1x8x256xf32>
    %8 = vector.shape_cast %7 : vector<1x8x256xf32> to vector<8x256xf32>
    %9 = vector.shape_cast %4 : vector<8x256xf32> to vector<1x8x256xf32>
    tpu.vector_store %arg6[%6, %c0_3, %c0_4], %9 {strides = array<i32>} : memref<20x8x256xf32, #tpu.memory_space<vmem>>, vector<1x8x256xf32>,
    %10 = vector.extract_strided_slice %3 {offsets = [0, 256], sizes = [8, 256], strides = [1, 1]} : vector<8x5120xf32> to vector<8x256xf32>
    %c1_i32 = arith.constant 1 : i32
    %11 = arith.addi %0, %c1_i32 : i32
    %12 = arith.index_cast %11 : i32 to index
    %c0_5 = arith.constant 0 : index
    %c0_6 = arith.constant 0 : index
    %13 = vector.load %arg6[%12, %c0_5, %c0_6] : memref<20x8x256xf32, #tpu.memory_space<vmem>>, vector<1x8x256xf32>
    %14 = vector.shape_cast %13 : vector<1x8x256xf32> to vector<8x256xf32>
    %15 = vector.shape_cast %10 : vector<8x256xf32> to vector<1x8x256xf32>
    tpu.vector_store %arg6[%12, %c0_5, %c0_6], %15 {strides = array<i32>} : memref<20x8x256xf32, #tpu.memory_space<vmem>>, vector<1x8x256xf32>,
    %16 = vector.extract_strided_slice %3 {offsets = [0, 512], sizes = [8, 256], strides = [1, 1]} : vector<8x5120xf32> to vector<8x256xf32>
    %c2_i32 = arith.constant 2 : i32
    %17 = arith.addi %0, %c2_i32 : i32
    %18 = arith.index_cast %17 : i32 to index
    %c0_7 = arith.constant 0 : index
    %c0_8 = arith.constant 0 : index
    %19 = vector.load %arg6[%18, %c0_7, %c0_8] : memref<20x8x256xf32, #tpu.memory_space<vmem>>, vector<1x8x256xf32>
    %20 = vector.shape_cast %19 : vector<1x8x256xf32> to vector<8x256xf32>
    %21 = vector.shape_cast %16 : vector<8x256xf32> to vector<1x8x256xf32>
    tpu.vector_store %arg6[%18, %c0_7, %c0_8], %21 {strides = array<i32>} : memref<20x8x256xf32, #tpu.memory_space<vmem>>, vector<1x8x256xf32>,
    %22 = vector.extract_strided_slice %3 {offsets = [0, 768], sizes = [8, 256], strides = [1, 1]} : vector<8x5120xf32> to vector<8x256xf32>
    %c3_i32 = arith.constant 3 : i32
    %23 = arith.addi %0, %c3_i32 : i32
    %24 = arith.index_cast %23 : i32 to index
    %c0_9 = arith.constant 0 : index
    %c0_10 = arith.constant 0 : index
    %25 = vector.load %arg6[%24, %c0_9, %c0_10] : memref<20x8x256xf32, #tpu.memory_space<vmem>>, vector<1x8x256xf32>
    %26 = vector.shape_cast %25 : vector<1x8x256xf32> to vector<8x256xf32>
    %27 = vector.shape_cast %22 : vector<8x256xf32> to vector<1x8x256xf32>
    tpu.vector_store %arg6[%24, %c0_9, %c0_10], %27 {strides = array<i32>} : memref<20x8x256xf32, #tpu.memory_space<vmem>>, vector<1x8x256xf32>,
    %28 = vector.extract_strided_slice %3 {offsets = [0, 1024], sizes = [8, 256], strides = [1, 1]} : vector<8x5120xf32> to vector<8x256xf32>
    %c4_i32 = arith.constant 4 : i32
    %29 = arith.addi %0, %c4_i32 : i32
    %30 = arith.index_cast %29 : i32 to index
    %c0_11 = arith.constant 0 : index
    %c0_12 = arith.constant 0 : index
    %31 = vector.load %arg6[%30, %c0_11, %c0_12] : memref<20x8x256xf32, #tpu.memory_space<vmem>>, vector<1x8x256xf32>
    %32 = vector.shape_cast %31 : vector<1x8x256xf32> to vector<8x256xf32>
    %33 = vector.shape_cast %28 : vector<8x256xf32> to vector<1x8x256xf32>
    tpu.vector_store %arg6[%30, %c0_11, %c0_12], %33 {strides = array<i32>} : memref<20x8x256xf32, #tpu.memory_space<vmem>>, vector<1x8x256xf32>,
    %34 = vector.extract_strided_slice %3 {offsets = [0, 1280], sizes = [8, 256], strides = [1, 1]} : vector<8x5120xf32> to vector<8x256xf32>
    %c5_i32 = arith.constant 5 : i32
    %35 = arith.addi %0, %c5_i32 : i32
    %36 = arith.index_cast %35 : i32 to index
    %c0_13 = arith.constant 0 : index
    %c0_14 = arith.constant 0 : index
    %37 = vector.load %arg6[%36, %c0_13, %c0_14] : memref<20x8x256xf32, #tpu.memory_space<vmem>>, vector<1x8x256xf32>
    %38 = vector.shape_cast %37 : vector<1x8x256xf32> to vector<8x256xf32>
    %39 = vector.shape_cast %34 : vector<8x256xf32> to vector<1x8x256xf32>
    tpu.vector_store %arg6[%36, %c0_13, %c0_14], %39 {strides = array<i32>} : memref<20x8x256xf32, #tpu.memory_space<vmem>>, vector<1x8x256xf32>,
    %40 = vector.extract_strided_slice %3 {offsets = [0, 1536], sizes = [8, 256], strides = [1, 1]} : vector<8x5120xf32> to vector<8x256xf32>
    %c6_i32 = arith.constant 6 : i32
    %41 = arith.addi %0, %c6_i32 : i32
    %42 = arith.index_cast %41 : i32 to index
    %c0_15 = arith.constant 0 : index
    %c0_16 = arith.constant 0 : index
    %43 = vector.load %arg6[%42, %c0_15, %c0_16] : memref<20x8x256xf32, #tpu.memory_space<vmem>>, vector<1x8x256xf32>
    %44 = vector.shape_cast %43 : vector<1x8x256xf32> to vector<8x256xf32>
    %45 = vector.shape_cast %40 : vector<8x256xf32> to vector<1x8x256xf32>
    tpu.vector_store %arg6[%42, %c0_15, %c0_16], %45 {strides = array<i32>} : memref<20x8x256xf32, #tpu.memory_space<vmem>>, vector<1x8x256xf32>,
    %46 = vector.extract_strided_slice %3 {offsets = [0, 1792], sizes = [8, 256], strides = [1, 1]} : vector<8x5120xf32> to vector<8x256xf32>
    %c7_i32 = arith.constant 7 : i32
    %47 = arith.addi %0, %c7_i32 : i32
    %48 = arith.index_cast %47 : i32 to index
    %c0_17 = arith.constant 0 : index
    %c0_18 = arith.constant 0 : index
    %49 = vector.load %arg6[%48, %c0_17, %c0_18] : memref<20x8x256xf32, #tpu.memory_space<vmem>>, vector<1x8x256xf32>
    %50 = vector.shape_cast %49 : vector<1x8x256xf32> to vector<8x256xf32>
    %51 = vector.shape_cast %46 : vector<8x256xf32> to vector<1x8x256xf32>
    tpu.vector_store %arg6[%48, %c0_17, %c0_18], %51 {strides = array<i32>} : memref<20x8x256xf32, #tpu.memory_space<vmem>>, vector<1x8x256xf32>,
    %52 = vector.extract_strided_slice %3 {offsets = [0, 2048], sizes = [8, 256], strides = [1, 1]} : vector<8x5120xf32> to vector<8x256xf32>
    %c8_i32 = arith.constant 8 : i32
    %53 = arith.addi %0, %c8_i32 : i32
    %54 = arith.index_cast %53 : i32 to index
    %c0_19 = arith.constant 0 : index
    %c0_20 = arith.constant 0 : index
    %55 = vector.load %arg6[%54, %c0_19, %c0_20] : memref<20x8x256xf32, #tpu.memory_space<vmem>>, vector<1x8x256xf32>
    %56 = vector.shape_cast %55 : vector<1x8x256xf32> to vector<8x256xf32>
    %57 = vector.shape_cast %52 : vector<8x256xf32> to vector<1x8x256xf32>
    tpu.vector_store %arg6[%54, %c0_19, %c0_20], %57 {strides = array<i32>} : memref<20x8x256xf32, #tpu.memory_space<vmem>>, vector<1x8x256xf32>,
    %58 = vector.extract_strided_slice %3 {offsets = [0, 2304], sizes = [8, 256], strides = [1, 1]} : vector<8x5120xf32> to vector<8x256xf32>
    %c9_i32 = arith.constant 9 : i32
    %59 = arith.addi %0, %c9_i32 : i32
    %60 = arith.index_cast %59 : i32 to index
    %c0_21 = arith.constant 0 : index
    %c0_22 = arith.constant 0 : index
    %61 = vector.load %arg6[%60, %c0_21, %c0_22] : memref<20x8x256xf32, #tpu.memory_space<vmem>>, vector<1x8x256xf32>
    %62 = vector.shape_cast %61 : vector<1x8x256xf32> to vector<8x256xf32>
    %63 = vector.shape_cast %58 : vector<8x256xf32> to vector<1x8x256xf32>
    tpu.vector_store %arg6[%60, %c0_21, %c0_22], %63 {strides = array<i32>} : memref<20x8x256xf32, #tpu.memory_space<vmem>>, vector<1x8x256xf32>,
    %64 = vector.extract_strided_slice %3 {offsets = [0, 2560], sizes = [8, 256], strides = [1, 1]} : vector<8x5120xf32> to vector<8x256xf32>
    %c10_i32 = arith.constant 10 : i32
    %65 = arith.addi %0, %c10_i32 : i32
    %66 = arith.index_cast %65 : i32 to index
    %c0_23 = arith.constant 0 : index
    %c0_24 = arith.constant 0 : index
    %67 = vector.load %arg6[%66, %c0_23, %c0_24] : memref<20x8x256xf32, #tpu.memory_space<vmem>>, vector<1x8x256xf32>
    %68 = vector.shape_cast %67 : vector<1x8x256xf32> to vector<8x256xf32>
    %69 = vector.shape_cast %64 : vector<8x256xf32> to vector<1x8x256xf32>
    tpu.vector_store %arg6[%66, %c0_23, %c0_24], %69 {strides = array<i32>} : memref<20x8x256xf32, #tpu.memory_space<vmem>>, vector<1x8x256xf32>,
    %70 = vector.extract_strided_slice %3 {offsets = [0, 2816], sizes = [8, 256], strides = [1, 1]} : vector<8x5120xf32> to vector<8x256xf32>
    %c11_i32 = arith.constant 11 : i32
    %71 = arith.addi %0, %c11_i32 : i32
    %72 = arith.index_cast %71 : i32 to index
    %c0_25 = arith.constant 0 : index
    %c0_26 = arith.constant 0 : index
    %73 = vector.load %arg6[%72, %c0_25, %c0_26] : memref<20x8x256xf32, #tpu.memory_space<vmem>>, vector<1x8x256xf32>
    %74 = vector.shape_cast %73 : vector<1x8x256xf32> to vector<8x256xf32>
    %75 = vector.shape_cast %70 : vector<8x256xf32> to vector<1x8x256xf32>
    tpu.vector_store %arg6[%72, %c0_25, %c0_26], %75 {strides = array<i32>} : memref<20x8x256xf32, #tpu.memory_space<vmem>>, vector<1x8x256xf32>,
    %76 = vector.extract_strided_slice %3 {offsets = [0, 3072], sizes = [8, 256], strides = [1, 1]} : vector<8x5120xf32> to vector<8x256xf32>
    %c12_i32 = arith.constant 12 : i32
    %77 = arith.addi %0, %c12_i32 : i32
    %78 = arith.index_cast %77 : i32 to index
    %c0_27 = arith.constant 0 : index
    %c0_28 = arith.constant 0 : index
    %79 = vector.load %arg6[%78, %c0_27, %c0_28] : memref<20x8x256xf32, #tpu.memory_space<vmem>>, vector<1x8x256xf32>
    %80 = vector.shape_cast %79 : vector<1x8x256xf32> to vector<8x256xf32>
    %81 = vector.shape_cast %76 : vector<8x256xf32> to vector<1x8x256xf32>
    tpu.vector_store %arg6[%78, %c0_27, %c0_28], %81 {strides = array<i32>} : memref<20x8x256xf32, #tpu.memory_space<vmem>>, vector<1x8x256xf32>,
    %82 = vector.extract_strided_slice %3 {offsets = [0, 3328], sizes = [8, 256], strides = [1, 1]} : vector<8x5120xf32> to vector<8x256xf32>
    %c13_i32 = arith.constant 13 : i32
    %83 = arith.addi %0, %c13_i32 : i32
    %84 = arith.index_cast %83 : i32 to index
    %c0_29 = arith.constant 0 : index
    %c0_30 = arith.constant 0 : index
    %85 = vector.load %arg6[%84, %c0_29, %c0_30] : memref<20x8x256xf32, #tpu.memory_space<vmem>>, vector<1x8x256xf32>
    %86 = vector.shape_cast %85 : vector<1x8x256xf32> to vector<8x256xf32>
    %87 = vector.shape_cast %82 : vector<8x256xf32> to vector<1x8x256xf32>
    tpu.vector_store %arg6[%84, %c0_29, %c0_30], %87 {strides = array<i32>} : memref<20x8x256xf32, #tpu.memory_space<vmem>>, vector<1x8x256xf32>,
    %88 = vector.extract_strided_slice %3 {offsets = [0, 3584], sizes = [8, 256], strides = [1, 1]} : vector<8x5120xf32> to vector<8x256xf32>
    %c14_i32 = arith.constant 14 : i32
    %89 = arith.addi %0, %c14_i32 : i32
    %90 = arith.index_cast %89 : i32 to index
    %c0_31 = arith.constant 0 : index
    %c0_32 = arith.constant 0 : index
    %91 = vector.load %arg6[%90, %c0_31, %c0_32] : memref<20x8x256xf32, #tpu.memory_space<vmem>>, vector<1x8x256xf32>
    %92 = vector.shape_cast %91 : vector<1x8x256xf32> to vector<8x256xf32>
    %93 = vector.shape_cast %88 : vector<8x256xf32> to vector<1x8x256xf32>
    tpu.vector_store %arg6[%90, %c0_31, %c0_32], %93 {strides = array<i32>} : memref<20x8x256xf32, #tpu.memory_space<vmem>>, vector<1x8x256xf32>,
    %94 = vector.extract_strided_slice %3 {offsets = [0, 3840], sizes = [8, 256], strides = [1, 1]} : vector<8x5120xf32> to vector<8x256xf32>
    %c15_i32 = arith.constant 15 : i32
    %95 = arith.addi %0, %c15_i32 : i32
    %96 = arith.index_cast %95 : i32 to index
    %c0_33 = arith.constant 0 : index
    %c0_34 = arith.constant 0 : index
    %97 = vector.load %arg6[%96, %c0_33, %c0_34] : memref<20x8x256xf32, #tpu.memory_space<vmem>>, vector<1x8x256xf32>
    %98 = vector.shape_cast %97 : vector<1x8x256xf32> to vector<8x256xf32>
    %99 = vector.shape_cast %94 : vector<8x256xf32> to vector<1x8x256xf32>
    tpu.vector_store %arg6[%96, %c0_33, %c0_34], %99 {strides = array<i32>} : memref<20x8x256xf32, #tpu.memory_space<vmem>>, vector<1x8x256xf32>,
    %100 = vector.extract_strided_slice %3 {offsets = [0, 4096], sizes = [8, 256], strides = [1, 1]} : vector<8x5120xf32> to vector<8x256xf32>
    %c16_i32 = arith.constant 16 : i32
    %101 = arith.addi %0, %c16_i32 : i32
    %102 = arith.index_cast %101 : i32 to index
    %c0_35 = arith.constant 0 : index
    %c0_36 = arith.constant 0 : index
    %103 = vector.load %arg6[%102, %c0_35, %c0_36] : memref<20x8x256xf32, #tpu.memory_space<vmem>>, vector<1x8x256xf32>
    %104 = vector.shape_cast %103 : vector<1x8x256xf32> to vector<8x256xf32>
    %105 = vector.shape_cast %100 : vector<8x256xf32> to vector<1x8x256xf32>
    tpu.vector_store %arg6[%102, %c0_35, %c0_36], %105 {strides = array<i32>} : memref<20x8x256xf32, #tpu.memory_space<vmem>>, vector<1x8x256xf32>,
    %106 = vector.extract_strided_slice %3 {offsets = [0, 4352], sizes = [8, 256], strides = [1, 1]} : vector<8x5120xf32> to vector<8x256xf32>
    %c17_i32 = arith.constant 17 : i32
    %107 = arith.addi %0, %c17_i32 : i32
    %108 = arith.index_cast %107 : i32 to index
    %c0_37 = arith.constant 0 : index
    %c0_38 = arith.constant 0 : index
    %109 = vector.load %arg6[%108, %c0_37, %c0_38] : memref<20x8x256xf32, #tpu.memory_space<vmem>>, vector<1x8x256xf32>
    %110 = vector.shape_cast %109 : vector<1x8x256xf32> to vector<8x256xf32>
    %111 = vector.shape_cast %106 : vector<8x256xf32> to vector<1x8x256xf32>
    tpu.vector_store %arg6[%108, %c0_37, %c0_38], %111 {strides = array<i32>} : memref<20x8x256xf32, #tpu.memory_space<vmem>>, vector<1x8x256xf32>,
    %112 = vector.extract_strided_slice %3 {offsets = [0, 4608], sizes = [8, 256], strides = [1, 1]} : vector<8x5120xf32> to vector<8x256xf32>
    %c18_i32 = arith.constant 18 : i32
    %113 = arith.addi %0, %c18_i32 : i32
    %114 = arith.index_cast %113 : i32 to index
    %c0_39 = arith.constant 0 : index
    %c0_40 = arith.constant 0 : index
    %115 = vector.load %arg6[%114, %c0_39, %c0_40] : memref<20x8x256xf32, #tpu.memory_space<vmem>>, vector<1x8x256xf32>
    %116 = vector.shape_cast %115 : vector<1x8x256xf32> to vector<8x256xf32>
    %117 = vector.shape_cast %112 : vector<8x256xf32> to vector<1x8x256xf32>
    tpu.vector_store %arg6[%114, %c0_39, %c0_40], %117 {strides = array<i32>} : memref<20x8x256xf32, #tpu.memory_space<vmem>>, vector<1x8x256xf32>,
    %118 = vector.extract_strided_slice %3 {offsets = [0, 4864], sizes = [8, 256], strides = [1, 1]} : vector<8x5120xf32> to vector<8x256xf32>
    %c19_i32 = arith.constant 19 : i32
    %119 = arith.addi %0, %c19_i32 : i32
    %120 = arith.index_cast %119 : i32 to index
    %c0_41 = arith.constant 0 : index
    %c0_42 = arith.constant 0 : index
    %121 = vector.load %arg6[%120, %c0_41, %c0_42] : memref<20x8x256xf32, #tpu.memory_space<vmem>>, vector<1x8x256xf32>
    %122 = vector.shape_cast %121 : vector<1x8x256xf32> to vector<8x256xf32>
    %123 = vector.shape_cast %118 : vector<8x256xf32> to vector<1x8x256xf32>
    tpu.vector_store %arg6[%120, %c0_41, %c0_42], %123 {strides = array<i32>} : memref<20x8x256xf32, #tpu.memory_space<vmem>>, vector<1x8x256xf32>,
    %c0_i32_43 = arith.constant 0 : i32
    %124 = arith.cmpi eq, %arg0, %c0_i32_43 : i32
    %125 = arith.extui %124 : i1 to i32
    %c0_i32_44 = arith.constant 0 : i32
    %126 = arith.cmpi ne, %125, %c0_i32_44 : i32
    scf.if %126 {
      %c0_45 = arith.constant 0 : index
      %c0_46 = arith.constant 0 : index
      %c0_47 = arith.constant 0 : index
      %127 = vector.load %arg6[%c0_45, %c0_46, %c0_47] : memref<20x8x256xf32, #tpu.memory_space<vmem>>, vector<20x8x256xf32>
      %cst_48 = arith.constant dense<0.000000e+00> : vector<20x8xf32>
      %128 = vector.multi_reduction <add>, %127, %cst_48 [2] : vector<20x8x256xf32> to vector<20x8xf32>
      %129 = vector.shape_cast %128 : vector<20x8xf32> to vector<20x8x1xf32>
      %130 = vector.extract_strided_slice %129 {offsets = [0, 0, 0], sizes = [1, 8, 1], strides = [1, 1, 1]} : vector<20x8x1xf32> to vector<1x8x1xf32>
      %131 = vector.shape_cast %130 : vector<1x8x1xf32> to vector<8x1xf32>
      %132 = vector.extract_strided_slice %129 {offsets = [1, 0, 0], sizes = [1, 8, 1], strides = [1, 1, 1]} : vector<20x8x1xf32> to vector<1x8x1xf32>
      %133 = vector.shape_cast %132 : vector<1x8x1xf32> to vector<8x1xf32>
      %134 = arith.addf %131, %133 : vector<8x1xf32>
      %135 = vector.extract_strided_slice %129 {offsets = [2, 0, 0], sizes = [1, 8, 1], strides = [1, 1, 1]} : vector<20x8x1xf32> to vector<1x8x1xf32>
      %136 = vector.shape_cast %135 : vector<1x8x1xf32> to vector<8x1xf32>
      %137 = arith.addf %134, %136 : vector<8x1xf32>
      %138 = vector.extract_strided_slice %129 {offsets = [3, 0, 0], sizes = [1, 8, 1], strides = [1, 1, 1]} : vector<20x8x1xf32> to vector<1x8x1xf32>
      %139 = vector.shape_cast %138 : vector<1x8x1xf32> to vector<8x1xf32>
      %140 = arith.addf %137, %139 : vector<8x1xf32>
      %141 = vector.extract_strided_slice %129 {offsets = [4, 0, 0], sizes = [1, 8, 1], strides = [1, 1, 1]} : vector<20x8x1xf32> to vector<1x8x1xf32>
      %142 = vector.shape_cast %141 : vector<1x8x1xf32> to vector<8x1xf32>
      %143 = arith.addf %140, %142 : vector<8x1xf32>
      %144 = vector.extract_strided_slice %129 {offsets = [5, 0, 0], sizes = [1, 8, 1], strides = [1, 1, 1]} : vector<20x8x1xf32> to vector<1x8x1xf32>
      %145 = vector.shape_cast %144 : vector<1x8x1xf32> to vector<8x1xf32>
      %146 = arith.addf %143, %145 : vector<8x1xf32>
      %147 = vector.extract_strided_slice %129 {offsets = [6, 0, 0], sizes = [1, 8, 1], strides = [1, 1, 1]} : vector<20x8x1xf32> to vector<1x8x1xf32>
      %148 = vector.shape_cast %147 : vector<1x8x1xf32> to vector<8x1xf32>
      %149 = arith.addf %146, %148 : vector<8x1xf32>
      %150 = vector.extract_strided_slice %129 {offsets = [7, 0, 0], sizes = [1, 8, 1], strides = [1, 1, 1]} : vector<20x8x1xf32> to vector<1x8x1xf32>
      %151 = vector.shape_cast %150 : vector<1x8x1xf32> to vector<8x1xf32>
      %152 = arith.addf %149, %151 : vector<8x1xf32>
      %153 = vector.extract_strided_slice %129 {offsets = [8, 0, 0], sizes = [1, 8, 1], strides = [1, 1, 1]} : vector<20x8x1xf32> to vector<1x8x1xf32>
      %154 = vector.shape_cast %153 : vector<1x8x1xf32> to vector<8x1xf32>
      %155 = arith.addf %152, %154 : vector<8x1xf32>
      %156 = vector.extract_strided_slice %129 {offsets = [9, 0, 0], sizes = [1, 8, 1], strides = [1, 1, 1]} : vector<20x8x1xf32> to vector<1x8x1xf32>
      %157 = vector.shape_cast %156 : vector<1x8x1xf32> to vector<8x1xf32>
      %158 = arith.addf %155, %157 : vector<8x1xf32>
      %159 = vector.extract_strided_slice %129 {offsets = [10, 0, 0], sizes = [1, 8, 1], strides = [1, 1, 1]} : vector<20x8x1xf32> to vector<1x8x1xf32>
      %160 = vector.shape_cast %159 : vector<1x8x1xf32> to vector<8x1xf32>
      %161 = arith.addf %158, %160 : vector<8x1xf32>
      %162 = vector.extract_strided_slice %129 {offsets = [11, 0, 0], sizes = [1, 8, 1], strides = [1, 1, 1]} : vector<20x8x1xf32> to vector<1x8x1xf32>
      %163 = vector.shape_cast %162 : vector<1x8x1xf32> to vector<8x1xf32>
      %164 = arith.addf %161, %163 : vector<8x1xf32>
      %165 = vector.extract_strided_slice %129 {offsets = [12, 0, 0], sizes = [1, 8, 1], strides = [1, 1, 1]} : vector<20x8x1xf32> to vector<1x8x1xf32>
      %166 = vector.shape_cast %165 : vector<1x8x1xf32> to vector<8x1xf32>
      %167 = arith.addf %164, %166 : vector<8x1xf32>
      %168 = vector.extract_strided_slice %129 {offsets = [13, 0, 0], sizes = [1, 8, 1], strides = [1, 1, 1]} : vector<20x8x1xf32> to vector<1x8x1xf32>
      %169 = vector.shape_cast %168 : vector<1x8x1xf32> to vector<8x1xf32>
      %170 = arith.addf %167, %169 : vector<8x1xf32>
      %171 = vector.extract_strided_slice %129 {offsets = [14, 0, 0], sizes = [1, 8, 1], strides = [1, 1, 1]} : vector<20x8x1xf32> to vector<1x8x1xf32>
      %172 = vector.shape_cast %171 : vector<1x8x1xf32> to vector<8x1xf32>
      %173 = arith.addf %170, %172 : vector<8x1xf32>
      %174 = vector.extract_strided_slice %129 {offsets = [15, 0, 0], sizes = [1, 8, 1], strides = [1, 1, 1]} : vector<20x8x1xf32> to vector<1x8x1xf32>
      %175 = vector.shape_cast %174 : vector<1x8x1xf32> to vector<8x1xf32>
      %176 = arith.addf %173, %175 : vector<8x1xf32>
      %177 = vector.extract_strided_slice %129 {offsets = [16, 0, 0], sizes = [1, 8, 1], strides = [1, 1, 1]} : vector<20x8x1xf32> to vector<1x8x1xf32>
      %178 = vector.shape_cast %177 : vector<1x8x1xf32> to vector<8x1xf32>
      %179 = arith.addf %176, %178 : vector<8x1xf32>
      %180 = vector.extract_strided_slice %129 {offsets = [17, 0, 0], sizes = [1, 8, 1], strides = [1, 1, 1]} : vector<20x8x1xf32> to vector<1x8x1xf32>
      %181 = vector.shape_cast %180 : vector<1x8x1xf32> to vector<8x1xf32>
      %182 = arith.addf %179, %181 : vector<8x1xf32>
      %183 = vector.extract_strided_slice %129 {offsets = [18, 0, 0], sizes = [1, 8, 1], strides = [1, 1, 1]} : vector<20x8x1xf32> to vector<1x8x1xf32>
      %184 = vector.shape_cast %183 : vector<1x8x1xf32> to vector<8x1xf32>
      %185 = arith.addf %182, %184 : vector<8x1xf32>
      %186 = vector.extract_strided_slice %129 {offsets = [19, 0, 0], sizes = [1, 8, 1], strides = [1, 1, 1]} : vector<20x8x1xf32> to vector<1x8x1xf32>
      %187 = vector.shape_cast %186 : vector<1x8x1xf32> to vector<8x1xf32>
      %188 = arith.addf %185, %187 : vector<8x1xf32>
      %cst_49 = arith.constant 1.95312503E-4 : f32
      %189 = vector.broadcast %cst_49 : f32 to vector<8x1xf32>
      %190 = arith.mulf %188, %189 : vector<8x1xf32>
      %191 = vector.shape_cast %190 : vector<8x1xf32> to vector<1x8x1xf32>
      %192 = vector.broadcast %191 : vector<1x8x1xf32> to vector<20x8x256xf32>
      %193 = arith.subf %127, %192 : vector<20x8x256xf32>
      %194 = arith.mulf %193, %193 : vector<20x8x256xf32>
      %cst_50 = arith.constant dense<0.000000e+00> : vector<20x8xf32>
      %195 = vector.multi_reduction <add>, %194, %cst_50 [2] : vector<20x8x256xf32> to vector<20x8xf32>
      %196 = vector.shape_cast %195 : vector<20x8xf32> to vector<20x8x1xf32>
      %197 = vector.extract_strided_slice %196 {offsets = [0, 0, 0], sizes = [1, 8, 1], strides = [1, 1, 1]} : vector<20x8x1xf32> to vector<1x8x1xf32>
      %198 = vector.shape_cast %197 : vector<1x8x1xf32> to vector<8x1xf32>
      %199 = vector.extract_strided_slice %196 {offsets = [1, 0, 0], sizes = [1, 8, 1], strides = [1, 1, 1]} : vector<20x8x1xf32> to vector<1x8x1xf32>
      %200 = vector.shape_cast %199 : vector<1x8x1xf32> to vector<8x1xf32>
      %201 = arith.addf %198, %200 : vector<8x1xf32>
      %202 = vector.extract_strided_slice %196 {offsets = [2, 0, 0], sizes = [1, 8, 1], strides = [1, 1, 1]} : vector<20x8x1xf32> to vector<1x8x1xf32>
      %203 = vector.shape_cast %202 : vector<1x8x1xf32> to vector<8x1xf32>
      %204 = arith.addf %201, %203 : vector<8x1xf32>
      %205 = vector.extract_strided_slice %196 {offsets = [3, 0, 0], sizes = [1, 8, 1], strides = [1, 1, 1]} : vector<20x8x1xf32> to vector<1x8x1xf32>
      %206 = vector.shape_cast %205 : vector<1x8x1xf32> to vector<8x1xf32>
      %207 = arith.addf %204, %206 : vector<8x1xf32>
      %208 = vector.extract_strided_slice %196 {offsets = [4, 0, 0], sizes = [1, 8, 1], strides = [1, 1, 1]} : vector<20x8x1xf32> to vector<1x8x1xf32>
      %209 = vector.shape_cast %208 : vector<1x8x1xf32> to vector<8x1xf32>
      %210 = arith.addf %207, %209 : vector<8x1xf32>
      %211 = vector.extract_strided_slice %196 {offsets = [5, 0, 0], sizes = [1, 8, 1], strides = [1, 1, 1]} : vector<20x8x1xf32> to vector<1x8x1xf32>
      %212 = vector.shape_cast %211 : vector<1x8x1xf32> to vector<8x1xf32>
      %213 = arith.addf %210, %212 : vector<8x1xf32>
      %214 = vector.extract_strided_slice %196 {offsets = [6, 0, 0], sizes = [1, 8, 1], strides = [1, 1, 1]} : vector<20x8x1xf32> to vector<1x8x1xf32>
      %215 = vector.shape_cast %214 : vector<1x8x1xf32> to vector<8x1xf32>
      %216 = arith.addf %213, %215 : vector<8x1xf32>
      %217 = vector.extract_strided_slice %196 {offsets = [7, 0, 0], sizes = [1, 8, 1], strides = [1, 1, 1]} : vector<20x8x1xf32> to vector<1x8x1xf32>
      %218 = vector.shape_cast %217 : vector<1x8x1xf32> to vector<8x1xf32>
      %219 = arith.addf %216, %218 : vector<8x1xf32>
      %220 = vector.extract_strided_slice %196 {offsets = [8, 0, 0], sizes = [1, 8, 1], strides = [1, 1, 1]} : vector<20x8x1xf32> to vector<1x8x1xf32>
      %221 = vector.shape_cast %220 : vector<1x8x1xf32> to vector<8x1xf32>
      %222 = arith.addf %219, %221 : vector<8x1xf32>
      %223 = vector.extract_strided_slice %196 {offsets = [9, 0, 0], sizes = [1, 8, 1], strides = [1, 1, 1]} : vector<20x8x1xf32> to vector<1x8x1xf32>
      %224 = vector.shape_cast %223 : vector<1x8x1xf32> to vector<8x1xf32>
      %225 = arith.addf %222, %224 : vector<8x1xf32>
      %226 = vector.extract_strided_slice %196 {offsets = [10, 0, 0], sizes = [1, 8, 1], strides = [1, 1, 1]} : vector<20x8x1xf32> to vector<1x8x1xf32>
      %227 = vector.shape_cast %226 : vector<1x8x1xf32> to vector<8x1xf32>
      %228 = arith.addf %225, %227 : vector<8x1xf32>
      %229 = vector.extract_strided_slice %196 {offsets = [11, 0, 0], sizes = [1, 8, 1], strides = [1, 1, 1]} : vector<20x8x1xf32> to vector<1x8x1xf32>
      %230 = vector.shape_cast %229 : vector<1x8x1xf32> to vector<8x1xf32>
      %231 = arith.addf %228, %230 : vector<8x1xf32>
      %232 = vector.extract_strided_slice %196 {offsets = [12, 0, 0], sizes = [1, 8, 1], strides = [1, 1, 1]} : vector<20x8x1xf32> to vector<1x8x1xf32>
      %233 = vector.shape_cast %232 : vector<1x8x1xf32> to vector<8x1xf32>
      %234 = arith.addf %231, %233 : vector<8x1xf32>
      %235 = vector.extract_strided_slice %196 {offsets = [13, 0, 0], sizes = [1, 8, 1], strides = [1, 1, 1]} : vector<20x8x1xf32> to vector<1x8x1xf32>
      %236 = vector.shape_cast %235 : vector<1x8x1xf32> to vector<8x1xf32>
      %237 = arith.addf %234, %236 : vector<8x1xf32>
      %238 = vector.extract_strided_slice %196 {offsets = [14, 0, 0], sizes = [1, 8, 1], strides = [1, 1, 1]} : vector<20x8x1xf32> to vector<1x8x1xf32>
      %239 = vector.shape_cast %238 : vector<1x8x1xf32> to vector<8x1xf32>
      %240 = arith.addf %237, %239 : vector<8x1xf32>
      %241 = vector.extract_strided_slice %196 {offsets = [15, 0, 0], sizes = [1, 8, 1], strides = [1, 1, 1]} : vector<20x8x1xf32> to vector<1x8x1xf32>
      %242 = vector.shape_cast %241 : vector<1x8x1xf32> to vector<8x1xf32>
      %243 = arith.addf %240, %242 : vector<8x1xf32>
      %244 = vector.extract_strided_slice %196 {offsets = [16, 0, 0], sizes = [1, 8, 1], strides = [1, 1, 1]} : vector<20x8x1xf32> to vector<1x8x1xf32>
      %245 = vector.shape_cast %244 : vector<1x8x1xf32> to vector<8x1xf32>
      %246 = arith.addf %243, %245 : vector<8x1xf32>
      %247 = vector.extract_strided_slice %196 {offsets = [17, 0, 0], sizes = [1, 8, 1], strides = [1, 1, 1]} : vector<20x8x1xf32> to vector<1x8x1xf32>
      %248 = vector.shape_cast %247 : vector<1x8x1xf32> to vector<8x1xf32>
      %249 = arith.addf %246, %248 : vector<8x1xf32>
      %250 = vector.extract_strided_slice %196 {offsets = [18, 0, 0], sizes = [1, 8, 1], strides = [1, 1, 1]} : vector<20x8x1xf32> to vector<1x8x1xf32>
      %251 = vector.shape_cast %250 : vector<1x8x1xf32> to vector<8x1xf32>
      %252 = arith.addf %249, %251 : vector<8x1xf32>
      %253 = vector.extract_strided_slice %196 {offsets = [19, 0, 0], sizes = [1, 8, 1], strides = [1, 1, 1]} : vector<20x8x1xf32> to vector<1x8x1xf32>
      %254 = vector.shape_cast %253 : vector<1x8x1xf32> to vector<8x1xf32>
      %255 = arith.addf %252, %254 : vector<8x1xf32>
      %cst_51 = arith.constant 1.95312503E-4 : f32
      %256 = vector.broadcast %cst_51 : f32 to vector<8x1xf32>
      %257 = arith.mulf %255, %256 : vector<8x1xf32>
      %c0_52 = arith.constant 0 : index
      %c0_53 = arith.constant 0 : index
      %258 = vector.load %arg3[%c0_52, %c0_53] : memref<8x1xf32, #tpu.memory_space<vmem>>, vector<8x1xf32>
      %cst_54 = arith.constant 9.99999974E-6 : f32
      %259 = vector.broadcast %cst_54 : f32 to vector<8x1xf32>
      %260 = arith.addf %257, %259 : vector<8x1xf32>
      %261 = math.rsqrt %260 : vector<8x1xf32>
      %262 = arith.mulf %258, %261 : vector<8x1xf32>
      %c0_55 = arith.constant 0 : index
      %c0_56 = arith.constant 0 : index
      %c0_57 = arith.constant 0 : index
      %263 = vector.load %arg5[%c0_55, %c0_56, %c0_57] : memref<20x1x1xf32, #tpu.memory_space<vmem>>, vector<20x1x1xf32>
      %264 = vector.shape_cast %262 : vector<8x1xf32> to vector<1x8x1xf32>
      %265 = vector.broadcast %264 : vector<1x8x1xf32> to vector<20x8x1xf32>
      %266 = vector.broadcast %263 : vector<20x1x1xf32> to vector<20x8x1xf32>
      %267 = arith.mulf %265, %266 : vector<20x8x1xf32>
      %268 = vector.broadcast %267 : vector<20x8x1xf32> to vector<20x8x256xf32>
      %269 = arith.mulf %193, %268 : vector<20x8x256xf32>
      %c0_58 = arith.constant 0 : index
      %c0_59 = arith.constant 0 : index
      %270 = vector.load %arg4[%c0_58, %c0_59] : memref<8x1xf32, #tpu.memory_space<vmem>>, vector<8x1xf32>
      %271 = vector.shape_cast %270 : vector<8x1xf32> to vector<1x8x1xf32>
      %272 = vector.broadcast %271 : vector<1x8x1xf32> to vector<20x8x1xf32>
      %273 = vector.broadcast %263 : vector<20x1x1xf32> to vector<20x8x1xf32>
      %274 = arith.mulf %272, %273 : vector<20x8x1xf32>
      %275 = vector.broadcast %274 : vector<20x8x1xf32> to vector<20x8x256xf32>
      %276 = arith.addf %269, %275 : vector<20x8x256xf32>
      %c0_60 = arith.constant 0 : index
      %c0_61 = arith.constant 0 : index
      %c0_62 = arith.constant 0 : index
      %277 = vector.load %arg6[%c0_60, %c0_61, %c0_62] : memref<20x8x256xf32, #tpu.memory_space<vmem>>, vector<20x8x256xf32>
      tpu.vector_store %arg6[%c0_60, %c0_61, %c0_62], %276 {strides = array<i32>} : memref<20x8x256xf32, #tpu.memory_space<vmem>>, vector<20x8x256xf32>,
    } else {
    }
    return
  }
  func.func @transform_0(%arg0: i32) -> (i32, i32) {
    %c0_i32 = arith.constant 0 : i32
    %c0_i32_0 = arith.constant 0 : i32
    return %c0_i32, %arg0 : i32, i32
  }
  func.func @transform_1(%arg0: i32) -> (i32, i32) {
    %c0_i32 = arith.constant 0 : i32
    %c0_i32_0 = arith.constant 0 : i32
    %c0_i32_1 = arith.constant 0 : i32
    return %c0_i32, %c0_i32_0 : i32, i32
  }
  func.func @transform_2(%arg0: i32) -> (i32, i32) {
    %c0_i32 = arith.constant 0 : i32
    %c0_i32_0 = arith.constant 0 : i32
    %c0_i32_1 = arith.constant 0 : i32
    return %c0_i32, %c0_i32_0 : i32, i32
  }
  func.func @transform_3(%arg0: i32) -> (i32, i32) {
    %c0_i32 = arith.constant 0 : i32
    %c0_i32_0 = arith.constant 0 : i32
    %c0_i32_1 = arith.constant 0 : i32
    return %c0_i32, %c0_i32_0 : i32, i32
  }
  func.func @transform_4(%arg0: i32) -> (i32, i32, i32) {
    %c0_i32 = arith.constant 0 : i32
    %c0_i32_0 = arith.constant 0 : i32
    %c0_i32_1 = arith.constant 0 : i32
    %c0_i32_2 = arith.constant 0 : i32
    return %c0_i32, %c0_i32_0, %c0_i32_1 : i32, i32, i32
  }
  func.func @transform_5(%arg0: i32) -> (i32, i32, i32) {
    %c0_i32 = arith.constant 0 : i32
    %c0_i32_0 = arith.constant 0 : i32
    %c0_i32_1 = arith.constant 0 : i32
    %c0_i32_2 = arith.constant 0 : i32
    return %c0_i32, %c0_i32_0, %c0_i32_1 : i32, i32, i32
  }
}

</mosaic_0001>

<bundles_post_ra>
// kernel: tile.6
= control target key start
LH: loop header
LB: loop body
LE: loop exit
PB: predicated region body
PF: predicated region fallthrough
CT: control target
= control target key end

     0   :  { %s22_s0 = inlined_call_operand.vmem [shape: f32[10], index: 0, kind: input, shape index: {}]   ;;  %s23_s1 = inlined_call_operand.vmem [shape: f32[2,10], index: 1, kind: output, shape index: {}]  }
   0x1   :  { %v4_v0 = vld [vmem:[%s22_s0] ss:$0 sm:$0xff] }
   0x2   :  { %5 = vst [vmem:[%s23_s1] sm:$0x3] %v4_v0 }

// kernel: tile.0
= control target key start
LH: loop header
LB: loop body
LE: loop exit
PB: predicated region body
PF: predicated region fallthrough
CT: control target
= control target key end

     0   :  { %s16_s8 = smov 3  ;;  %s236_s9 = smov 127   ;;  %vm7_vm0 = vcmask 7168   ;;  %s328_s0 = inlined_call_operand.vmem [shape: f32[2,10], index: 0, kind: input, shape index: {}]   ;;  %s329_s1 = inlined_call_operand.vmem [shape: f32[20,1,1], index: 1, kind: output, shape index: {}]  }
   0x1   :  { %v4_v0 = vld [vmem:[%s328_s0] sm:$0x3]  ;;  %s24_s0 = smov 3  ;;  %s237_s10 = smov 125  }
   0x2   :  { %5 = vst [vmem:[#allocation1] sm:$0x3] %v4_v0  ;;  %s44_s11 = smov 3  ;;  %s238_s12 = smov 126  }
   0x3   :  { %s239_s13 = smov 124   ;;  %s52_s14 = smov 3 }
   0x4   :  { %s240_s15 = smov 123   ;;  %s241_s16 = smov 122  }
   0x5   :  { %s242_s21 = smov 121   ;;  %s243_s22 = smov 120  }
   0x6   :  { %s244_s23 = smov 119  }
   0x9   :  { %v9_v1 = vld [vmem:[#allocation1] sm:$0x3]  }
   0xa   :  { %v25_v2 = vld [vmem:[#allocation1 + $0x1] ss:$-1 sm:%s24_s0]   ;;  %10 = vrot.lane.b32.xlu0 %v9_v1, %s236_s9 }
   0xb   :  { %26 = vrot.lane.b32.xlu1 %v25_v2, %s237_s10  ;;  %v17_v3 = vld [vmem:[#allocation1 + $0x1] ss:$-1 sm:%s16_s8]  }
   0xc   :  { %v31_v4 = vld [vmem:[#allocation1] sm:$0x3]  }
   0xd   :  { %v6_v5 = vld [vmem:[#allocation1] sm:$0x3]  }
   0xe   :  { %8 = vst.msk [vmem:[#allocation0] ss:$80 sm:$0x3] %vm7_vm0, %v6_v5   ;;  %18 = vrot.lane.b32.xlu0 %v17_v3, %s238_s12  ;;  %v37_v6 = vld [vmem:[#allocation1] sm:$0x3]  }
   0xf   :  { %32 = vrot.lane.b32.xlu1 %v31_v4, %s239_s13  ;;  %v45_v7 = vld [vmem:[#allocation1 + $0x1] ss:$-1 sm:%s44_s11]  }
  0x10   :  { %v53_v8 = vld [vmem:[#allocation1 + $0x1] ss:$-1 sm:%s52_s14]  }
  0x11   :  { %v59_v9 = vld [vmem:[#allocation1] sm:$0x3]  }
  0x12   :  { %38 = vrot.lane.b32.xlu0 %v37_v6, %s240_s15  ;;  %v65_v12 = vld [vmem:[#allocation1] sm:$0x3]  }
  0x13   :  { %46 = vrot.lane.b32.xlu1 %v45_v7, %s241_s16 }
  0x15   :  { %v74_v10 = vld [vmem:[#allocation0] sm:$0x1]  ;;  %v131_v11 = vld [vmem:[#allocation0 + $0x50] sm:$0x1] }
  0x16   :  { %76 = vst [vmem:[%s329_s1] sm:$0x1] %v74_v10  ;;  %217 = vst [vmem:[%s329_s1 + $0xa] sm:$0x1] %v131_v11  ;;  %54 = vrot.lane.b32.xlu0 %v53_v8, %s242_s21 }
  0x17   :  { %60 = vrot.lane.b32.xlu1 %v59_v9, %s243_s22 }
  0x1a   :  { %66 = vrot.lane.b32.xlu0 %v65_v12, %s244_s23 }
  0x7c   :  { %v11_v13 = vpop.permute.xlu0 %10  }
  0x7d   :  { %v27_v14 = vpop.permute.xlu1 %26   ;;  %14 = vst.msk [vmem:[#allocation0 + $0x8] ss:$80 sm:$0x3] %vm7_vm0, %v11_v13  }
  0x7e   :  { %30 = vst.msk [vmem:[#allocation0 + $0x68] ss:$-80 sm:$0x3] %vm7_vm0, %v27_v14  }
  0x80   :  { %v19_v15 = vpop.permute.xlu0 %18  }
  0x81   :  { %v33_v16 = vpop.permute.xlu1 %32   ;;  %22 = vst.msk [vmem:[#allocation0 + $0x60] ss:$-80 sm:$0x3] %vm7_vm0, %v19_v15  }
  0x82   :  { %36 = vst.msk [vmem:[#allocation0 + $0x20] ss:$80 sm:$0x3] %vm7_vm0, %v33_v16  }
  0x84   :  { %v78_v17 = vld [vmem:[#allocation0 + $0x8] sm:$0x1]  ;;  %v137_v18 = vld [vmem:[#allocation0 + $0x58] sm:$0x1]  ;;  %v39_v20 = vpop.permute.xlu0 %38  }
  0x85   :  { %v89_v19 = vld [vmem:[#allocation0 + $0x18] sm:$0x1]  ;;  %v47_v21 = vpop.permute.xlu1 %46   ;;  %208 = vst [vmem:[%s329_s1 + $0x1] sm:$0x1] %v78_v17  ;;  %218 = vst [vmem:[%s329_s1 + $0xb] sm:$0x1] %v137_v18 }
  0x86   :  { %210 = vst [vmem:[%s329_s1 + $0x3] sm:$0x1] %v89_v19  ;;  %v149_v22 = vld [vmem:[#allocation0 + $0x68] sm:$0x1] }
  0x87   :  { %42 = vst.msk [vmem:[#allocation0 + $0x28] ss:$80 sm:$0x3] %vm7_vm0, %v39_v20   ;;  %50 = vst.msk [vmem:[#allocation0 + $0x80] ss:$-80 sm:$0x3] %vm7_vm0, %v47_v21  }
  0x88   :  { %220 = vst [vmem:[%s329_s1 + $0xd] sm:$0x1] %v149_v22  ;;  %v83_v23 = vld [vmem:[#allocation0 + $0x10] sm:$0x1]  ;;  %v143_v24 = vld [vmem:[#allocation0 + $0x60] sm:$0x1]  ;;  %v55_v26 = vpop.permute.xlu0 %54  }
  0x89   :  { %v95_v25 = vld [vmem:[#allocation0 + $0x20] sm:$0x1]  ;;  %v61_v27 = vpop.permute.xlu1 %60   ;;  %209 = vst [vmem:[%s329_s1 + $0x2] sm:$0x1] %v83_v23  ;;  %219 = vst [vmem:[%s329_s1 + $0xc] sm:$0x1] %v143_v24 }
  0x8a   :  { %211 = vst [vmem:[%s329_s1 + $0x4] sm:$0x1] %v95_v25  ;;  %v155_v28 = vld [vmem:[#allocation0 + $0x70] sm:$0x1] }
  0x8b   :  { %58 = vst.msk [vmem:[#allocation0 + $0x88] ss:$-80 sm:$0x3] %vm7_vm0, %v55_v26   ;;  %64 = vst.msk [vmem:[#allocation0 + $0x40] ss:$80 sm:$0x3] %vm7_vm0, %v61_v27  }
  0x8c   :  { %221 = vst [vmem:[%s329_s1 + $0xe] sm:$0x1] %v155_v28  ;;  %v67_v32 = vpop.permute.xlu0 %66  }
  0x8d   :  { %70 = vst.msk [vmem:[#allocation0 + $0x48] ss:$80 sm:$0x3] %vm7_vm0, %v67_v32  }
  0x8e   :  { %v101_v29 = vld [vmem:[#allocation0 + $0x28] sm:$0x1]  ;;  %v161_v30 = vld [vmem:[#allocation0 + $0x78] sm:$0x1]  ;;  %v107_v31 = vld [vmem:[#allocation0 + $0x30] sm:$0x1] }
  0x8f   :  { %212 = vst [vmem:[%s329_s1 + $0x5] sm:$0x1] %v101_v29  ;;  %222 = vst [vmem:[%s329_s1 + $0xf] sm:$0x1] %v161_v30  ;;  %v167_v33 = vld [vmem:[#allocation0 + $0x80] sm:$0x1] }
  0x90   :  { %213 = vst [vmem:[%s329_s1 + $0x6] sm:$0x1] %v107_v31  ;;  %223 = vst [vmem:[%s329_s1 + $0x10] sm:$0x1] %v167_v33 }
  0x92   :  { %v113_v34 = vld [vmem:[#allocation0 + $0x38] sm:$0x1]  ;;  %v173_v35 = vld [vmem:[#allocation0 + $0x88] sm:$0x1]  ;;  %v119_v36 = vld [vmem:[#allocation0 + $0x40] sm:$0x1] }
  0x93   :  { %214 = vst [vmem:[%s329_s1 + $0x7] sm:$0x1] %v113_v34  ;;  %224 = vst [vmem:[%s329_s1 + $0x11] sm:$0x1] %v173_v35  ;;  %v179_v37 = vld [vmem:[#allocation0 + $0x90] sm:$0x1] }
  0x94   :  { %215 = vst [vmem:[%s329_s1 + $0x8] sm:$0x1] %v119_v36  ;;  %225 = vst [vmem:[%s329_s1 + $0x12] sm:$0x1] %v179_v37  ;;  %v125_v38 = vld [vmem:[#allocation0 + $0x48] sm:$0x1] }
  0x95   :  { %v185_v39 = vld [vmem:[#allocation0 + $0x98] sm:$0x1]  ;;  %216 = vst [vmem:[%s329_s1 + $0x9] sm:$0x1] %v125_v38 }
  0x96   :  { %226 = vst [vmem:[%s329_s1 + $0x13] sm:$0x1] %v185_v39 }

// kernel: tebn_layer_forward.1
= control target key start
LH: loop header
LB: loop body
LE: loop exit
PB: predicated region body
PF: predicated region fallthrough
CT: control target
= control target key end

     0   :  { %v2701_v3 = vmov 0   ;;  %vm743_vm0 = vcmask 392192   ;;  %s3893_s0 = inlined_call_operand.vmem [shape: bf16[48,5120], index: 0, kind: input, shape index: {}]   ;;  %s3894_s1 = inlined_call_operand.vmem [shape: bf16[8,48], index: 1, kind: input, shape index: {}]   ;;  %s3895_s3 = inlined_call_operand.vmem [shape: f32[8,1], index: 3, kind: input, shape index: {}]   ;;  %s3896_s4 = inlined_call_operand.vmem [shape: f32[20,1,1], index: 4, kind: input, shape index: {}]   ;;  %s3897_s2 = inlined_call_operand.vmem [shape: f32[8,1], index: 2, kind: input, shape index: {}]   ;;  %s3898_s5 = inlined_call_operand.vmem [shape: f32[20,8,256], index: 5, kind: output, shape index: {}]  }
   0x1   :  { %v23_v0 = vld [vmem:[%s3893_s0] sm:$0xff]  ;;  %v24_v2 = vld [vmem:[%s3893_s0 + $0x8] sm:$0xff]  ;;  %779 = vmatprep.mubr.bf16.mxu0 %v2701_v3  ;;  %820 = vmatprep.mubr.bf16.mxu1 %v2701_v3  ;;  %v25_v23 = vld [vmem:[%s3893_s0 + $0x10] sm:$0xff] }
   0x2   :  { %v43_v1 = vld [vmem:[%s3893_s0 + $0xa0] sm:$0xff]  ;;  %v44_v5 = vld [vmem:[%s3893_s0 + $0xa8] sm:$0xff]  ;;  %2697 = vset.pattern.permute.xlu1 %v2701_v3  ;;  %2698 = vset.pattern.permute.xlu0 %v2701_v3  ;;  %v45_v24 = vld [vmem:[%s3893_s0 + $0xb0] sm:$0xff] }
   0x3   :  { %v2499_v4 = vcombine.high %v23_v0, %v43_v1  ;;  %v2498_v6 = vcombine.low %v23_v0, %v43_v1  ;;  %v63_v7 = vld [vmem:[%s3893_s0 + $0x140] sm:$0xff]  ;;  %v2501_v9 = vcombine.high %v24_v2, %v44_v5  ;;  %v2500_v10 = vcombine.low %v24_v2, %v44_v5  ;;  %v64_v12 = vld [vmem:[%s3893_s0 + $0x148] sm:$0xff]  ;;  %v26_v25 = vld [vmem:[%s3893_s0 + $0x18] sm:$0xff] }
   0x4   :  { %v83_v8 = vld [vmem:[%s3893_s0 + $0x1e0] sm:$0xff]  ;;  %v84_v13 = vld [vmem:[%s3893_s0 + $0x1e8] sm:$0xff]  ;;  %v46_v26 = vld [vmem:[%s3893_s0 + $0xb8] sm:$0xff]  ;;  %v2503_v29 = vcombine.high %v25_v23, %v45_v24  ;;  %v2502_v36 = vcombine.low %v25_v23, %v45_v24 }
   0x5   :  { %v2539_v11 = vcombine.high %v63_v7, %v83_v8  ;;  %v103_v14 = vld [vmem:[%s3893_s0 + $0x280] sm:$0xff]  ;;  %747 = vmatprep.subr.bf16.mxu0 %v2499_v4  ;;  %v2541_v15 = vcombine.high %v64_v12, %v84_v13  ;;  %v104_v17 = vld [vmem:[%s3893_s0 + $0x288] sm:$0xff]  ;;  %788 = vmatprep.subr.bf16.mxu1 %v2501_v9  ;;  %v2538_v19 = vcombine.low %v63_v7, %v83_v8  ;;  %v65_v31 = vld [vmem:[%s3893_s0 + $0x150] sm:$0xff] }
   0x6   :  { %v123_v16 = vld [vmem:[%s3893_s0 + $0x320] sm:$0xff]  ;;  %v124_v18 = vld [vmem:[%s3893_s0 + $0x328] sm:$0xff]  ;;  %748 = vmatpush1.bf16.msra.mxu0 %v2498_v6  ;;  %789 = vmatpush1.bf16.msra.mxu1 %v2500_v10  ;;  %v2540_v20 = vcombine.low %v64_v12, %v84_v13  ;;  %v2505_v30 = vcombine.high %v26_v25, %v46_v26  ;;  %v85_v32 = vld [vmem:[%s3893_s0 + $0x1f0] sm:$0xff]  ;;  %v2504_v37 = vcombine.low %v26_v25, %v46_v26 }
   0x7   :  { %749 = vmatprep.subr.bf16.mxu0 %v2539_v11  ;;  %v2579_v21 = vcombine.high %v103_v14, %v123_v16  ;;  %790 = vmatprep.subr.bf16.mxu1 %v2541_v15  ;;  %v2581_v22 = vcombine.high %v104_v17, %v124_v18  ;;  %v2578_v27 = vcombine.low %v103_v14, %v123_v16  ;;  %v66_v33 = vld [vmem:[%s3893_s0 + $0x158] sm:$0xff]  ;;  %v2799_v35 = vld [vmem:[%s3894_s1] sm:$0xf]  ;;  %v105_v40 = vld [vmem:[%s3893_s0 + $0x290] sm:$0xff] }
   0x8   :  { %v2580_v28 = vcombine.low %v104_v17, %v124_v18  ;;  %v86_v34 = vld [vmem:[%s3893_s0 + $0x1f8] sm:$0xff]  ;;  %v2543_v38 = vcombine.high %v65_v31, %v85_v32  ;;  %v125_v41 = vld [vmem:[%s3893_s0 + $0x330] sm:$0xff]  ;;  %v2542_v44 = vcombine.low %v65_v31, %v85_v32  ;;  %v27_v48 = vld [vmem:[%s3893_s0 + $0x20] sm:$0xff] }
   0x9   :  { %v2545_v39 = vcombine.high %v66_v33, %v86_v34  ;;  %v106_v42 = vld [vmem:[%s3893_s0 + $0x298] sm:$0xff]  ;;  %v2544_v45 = vcombine.low %v66_v33, %v86_v34  ;;  %v2583_v46 = vcombine.high %v105_v40, %v125_v41  ;;  %v47_v49 = vld [vmem:[%s3893_s0 + $0xc0] sm:$0xff]  ;;  %v28_v50 = vld [vmem:[%s3893_s0 + $0x28] sm:$0xff]  ;;  %v2582_v52 = vcombine.low %v105_v40, %v125_v41 }
   0xa   :  { %750 = vmatpush1.bf16.msra.mxu0 %v2538_v19  ;;  %791 = vmatpush1.bf16.msra.mxu1 %v2540_v20  ;;  %v126_v43 = vld [vmem:[%s3893_s0 + $0x338] sm:$0xff]  ;;  %v48_v51 = vld [vmem:[%s3893_s0 + $0xc8] sm:$0xff]  ;;  %v2507_v54 = vcombine.high %v27_v48, %v47_v49  ;;  %v67_v56 = vld [vmem:[%s3893_s0 + $0x160] sm:$0xff]  ;;  %v2506_v60 = vcombine.low %v27_v48, %v47_v49 }
   0xb   :  { %751 = vmatprep.subr.bf16.mxu0 %v2579_v21  ;;  %792 = vmatprep.subr.bf16.mxu1 %v2581_v22  ;;  %v2585_v47 = vcombine.high %v106_v42, %v126_v43  ;;  %v2584_v53 = vcombine.low %v106_v42, %v126_v43  ;;  %v2509_v55 = vcombine.high %v28_v50, %v48_v51  ;;  %v87_v57 = vld [vmem:[%s3893_s0 + $0x200] sm:$0xff]  ;;  %v68_v58 = vld [vmem:[%s3893_s0 + $0x168] sm:$0xff]  ;;  %v29_v9 = vld [vmem:[%s3893_s0 + $0x30] sm:$0xff] }
   0xc   :  { %v88_v59 = vld [vmem:[%s3893_s0 + $0x208] sm:$0xff]  ;;  %v2508_v61 = vcombine.low %v28_v50, %v48_v51  ;;  %v2547_v62 = vcombine.high %v67_v56, %v87_v57  ;;  %v107_v0 = vld [vmem:[%s3893_s0 + $0x2a0] sm:$0xff]  ;;  %v2546_v5 = vcombine.low %v67_v56, %v87_v57  ;;  %v49_v10 = vld [vmem:[%s3893_s0 + $0xd0] sm:$0xff] }
   0xd   :  { %v2549_v63 = vcombine.high %v68_v58, %v88_v59  ;;  %v127_v1 = vld [vmem:[%s3893_s0 + $0x340] sm:$0xff]  ;;  %v108_v2 = vld [vmem:[%s3893_s0 + $0x2a8] sm:$0xff]  ;;  %v2548_v6 = vcombine.low %v68_v58, %v88_v59  ;;  %v30_v11 = vld [vmem:[%s3893_s0 + $0x38] sm:$0xff]  ;;  %v2511_v15 = vcombine.high %v29_v9, %v49_v10  ;;  %v2510_v21 = vcombine.low %v29_v9, %v49_v10 }
   0xe   :  { %752 = vmatpush1.bf16.msra.mxu0 %v2578_v27  ;;  %793 = vmatpush1.bf16.msra.mxu1 %v2580_v28  ;;  %v128_v4 = vld [vmem:[%s3893_s0 + $0x348] sm:$0xff]  ;;  %v2587_v7 = vcombine.high %v107_v0, %v127_v1  ;;  %v50_v12 = vld [vmem:[%s3893_s0 + $0xd8] sm:$0xff]  ;;  %v2586_v13 = vcombine.low %v107_v0, %v127_v1  ;;  %v69_v17 = vld [vmem:[%s3893_s0 + $0x170] sm:$0xff] }
   0xf   :  { %829 = vmatprep.subr.bf16.mxu0 %v2503_v29  ;;  %870 = vmatprep.subr.bf16.mxu1 %v2505_v30  ;;  %v2589_v8 = vcombine.high %v108_v2, %v128_v4  ;;  %v2588_v14 = vcombine.low %v108_v2, %v128_v4  ;;  %v2513_v16 = vcombine.high %v30_v11, %v50_v12  ;;  %v89_v18 = vld [vmem:[%s3893_s0 + $0x210] sm:$0xff]  ;;  %v70_v19 = vld [vmem:[%s3893_s0 + $0x178] sm:$0xff]  ;;  %v31_v33 = vld [vmem:[%s3893_s0 + $0x40] sm:$0xff] }
  0x10   :  { %v90_v20 = vld [vmem:[%s3893_s0 + $0x218] sm:$0xff]  ;;  %v2512_v22 = vcombine.low %v30_v11, %v50_v12  ;;  %v2551_v23 = vcombine.high %v69_v17, %v89_v18  ;;  %v109_v25 = vld [vmem:[%s3893_s0 + $0x2b0] sm:$0xff]  ;;  %v2550_v29 = vcombine.low %v69_v17, %v89_v18  ;;  %v51_v34 = vld [vmem:[%s3893_s0 + $0xe0] sm:$0xff] }
  0x11   :  { %2618 = vmatmul.mubr.msk.bf16.vlgmr.msra.gmra.mrb[0].mxu0 %vm743_vm0, %v2799_v35  ;;  %2619 = vmatmul.mubr.msk.bf16.vlgmr.msra.gmra.mrb[0].mxu1 %vm743_vm0, %v2799_v35  ;;  %v2553_v24 = vcombine.high %v70_v19, %v90_v20  ;;  %v129_v26 = vld [vmem:[%s3893_s0 + $0x350] sm:$0xff]  ;;  %v110_v27 = vld [vmem:[%s3893_s0 + $0x2b8] sm:$0xff]  ;;  %v2552_v30 = vcombine.low %v70_v19, %v90_v20  ;;  %v2515_v40 = vcombine.high %v31_v33, %v51_v34  ;;  %v71_v42 = vld [vmem:[%s3893_s0 + $0x180] sm:$0xff] }
  0x12   :  { %830 = vmatpush1.bf16.msra.mxu0 %v2502_v36  ;;  %871 = vmatpush1.bf16.msra.mxu1 %v2504_v37  ;;  %v130_v28 = vld [vmem:[%s3893_s0 + $0x358] sm:$0xff]  ;;  %v2591_v31 = vcombine.high %v109_v25, %v129_v26  ;;  %v32_v36 = vld [vmem:[%s3893_s0 + $0x48] sm:$0xff]  ;;  %v91_v43 = vld [vmem:[%s3893_s0 + $0x220] sm:$0xff] }
  0x13   :  { %831 = vmatprep.subr.bf16.mxu0 %v2543_v38  ;;  %872 = vmatprep.subr.bf16.mxu1 %v2545_v39  ;;  %v2593_v32 = vcombine.high %v110_v27, %v130_v28  ;;  %v52_v37 = vld [vmem:[%s3893_s0 + $0xe8] sm:$0xff]  ;;  %v2590_v38 = vcombine.low %v109_v25, %v129_v26  ;;  %v2592_v39 = vcombine.low %v110_v27, %v130_v28  ;;  %v111_v50 = vld [vmem:[%s3893_s0 + $0x2c0] sm:$0xff]  ;;  %v33_v58 = vld [vmem:[%s3893_s0 + $0x50] sm:$0xff] }
  0x14   :  { %861 = vmatprep.mubr.bf16.mxu0 %v2701_v3  ;;  %902 = vmatprep.mubr.bf16.mxu1 %v2701_v3  ;;  %v2517_v41 = vcombine.high %v32_v36, %v52_v37  ;;  %v2555_v48 = vcombine.high %v71_v42, %v91_v43  ;;  %v131_v51 = vld [vmem:[%s3893_s0 + $0x360] sm:$0xff]  ;;  %v53_v59 = vld [vmem:[%s3893_s0 + $0xf0] sm:$0xff] }
  0x15   :  { %v2595_v56 = vcombine.high %v111_v50, %v131_v51  ;;  %v2519_v0 = vcombine.high %v33_v58, %v53_v59  ;;  %v73_v2 = vld [vmem:[%s3893_s0 + $0x190] sm:$0xff]  ;;  %v35_v19 = vld [vmem:[%s3893_s0 + $0x60] sm:$0xff] }
  0x16   :  { %832 = vmatpush1.bf16.msra.mxu0 %v2542_v44  ;;  %873 = vmatpush1.bf16.msra.mxu1 %v2544_v45  ;;  %v72_v44 = vld [vmem:[%s3893_s0 + $0x188] sm:$0xff]  ;;  %v93_v4 = vld [vmem:[%s3893_s0 + $0x230] sm:$0xff]  ;;  %v55_v20 = vld [vmem:[%s3893_s0 + $0x100] sm:$0xff] }
  0x17   :  { %833 = vmatprep.subr.bf16.mxu0 %v2583_v46  ;;  %874 = vmatprep.subr.bf16.mxu1 %v2585_v47  ;;  %v92_v45 = vld [vmem:[%s3893_s0 + $0x228] sm:$0xff]  ;;  %v2514_v46 = vcombine.low %v31_v33, %v51_v34  ;;  %v2516_v47 = vcombine.low %v32_v36, %v52_v37  ;;  %v2559_v9 = vcombine.high %v73_v2, %v93_v4  ;;  %v113_v11 = vld [vmem:[%s3893_s0 + $0x2d0] sm:$0xff]  ;;  %v75_v27 = vld [vmem:[%s3893_s0 + $0x1a0] sm:$0xff] }
  0x18   :  { %v2557_v49 = vcombine.high %v72_v44, %v92_v45  ;;  %v133_v12 = vld [vmem:[%s3893_s0 + $0x370] sm:$0xff]  ;;  %v2523_v25 = vcombine.high %v35_v19, %v55_v20  ;;  %v95_v28 = vld [vmem:[%s3893_s0 + $0x240] sm:$0xff] }
  0x19   :  { %v2599_v17 = vcombine.high %v113_v11, %v133_v12  ;;  %v2563_v33 = vcombine.high %v75_v27, %v95_v28  ;;  %v115_v36 = vld [vmem:[%s3893_s0 + $0x2e0] sm:$0xff] }
  0x1a   :  { %834 = vmatpush1.bf16.msra.mxu0 %v2582_v52  ;;  %875 = vmatpush1.bf16.msra.mxu1 %v2584_v53  ;;  %v112_v52 = vld [vmem:[%s3893_s0 + $0x2c8] sm:$0xff]  ;;  %v135_v37 = vld [vmem:[%s3893_s0 + $0x380] sm:$0xff] }
  0x1b   :  { %911 = vmatprep.subr.bf16.mxu0 %v2507_v54  ;;  %952 = vmatprep.subr.bf16.mxu1 %v2509_v55  ;;  %v132_v53 = vld [vmem:[%s3893_s0 + $0x368] sm:$0xff]  ;;  %v2554_v54 = vcombine.low %v71_v42, %v91_v43  ;;  %v2556_v55 = vcombine.low %v72_v44, %v92_v45  ;;  %v2603_v42 = vcombine.high %v115_v36, %v135_v37  ;;  %v37_v44 = vld [vmem:[%s3893_s0 + $0x70] sm:$0xff] }
  0x1c   :  { %v2597_v57 = vcombine.high %v112_v52, %v132_v53  ;;  %v57_v45 = vld [vmem:[%s3893_s0 + $0x110] sm:$0xff] }
  0x1d   :  { %2620 = vmatmul.mubr.msk.bf16.vlgmr.msra.gmra.mrb[4].mxu0 %vm743_vm0, %v2799_v35  ;;  %2621 = vmatmul.mubr.msk.bf16.vlgmr.msra.gmra.mrb[4].mxu1 %vm743_vm0, %v2799_v35 }
  0x1e   :  { %912 = vmatpush1.bf16.msra.mxu0 %v2506_v60  ;;  %953 = vmatpush1.bf16.msra.mxu1 %v2508_v61  ;;  %v34_v60 = vld [vmem:[%s3893_s0 + $0x58] sm:$0xff] }
  0x1f   :  { %913 = vmatprep.subr.bf16.mxu0 %v2547_v62  ;;  %954 = vmatprep.subr.bf16.mxu1 %v2549_v63  ;;  %v54_v61 = vld [vmem:[%s3893_s0 + $0xf8] sm:$0xff]  ;;  %v2594_v62 = vcombine.low %v111_v50, %v131_v51  ;;  %v2596_v63 = vcombine.low %v112_v52, %v132_v53  ;;  %v2527_v50 = vcombine.high %v37_v44, %v57_v45  ;;  %v77_v52 = vld [vmem:[%s3893_s0 + $0x1b0] sm:$0xff] }
  0x20   :  { %943 = vmatprep.mubr.bf16.mxu0 %v2701_v3  ;;  %984 = vmatprep.mubr.bf16.mxu1 %v2701_v3  ;;  %v2521_v1 = vcombine.high %v34_v60, %v54_v61  ;;  %v97_v53 = vld [vmem:[%s3893_s0 + $0x250] sm:$0xff] }
  0x22   :  { %914 = vmatpush1.bf16.msra.mxu0 %v2546_v5  ;;  %955 = vmatpush1.bf16.msra.mxu1 %v2548_v6  ;;  %v74_v5 = vld [vmem:[%s3893_s0 + $0x198] sm:$0xff] }
  0x23   :  { %915 = vmatprep.subr.bf16.mxu0 %v2587_v7  ;;  %956 = vmatprep.subr.bf16.mxu1 %v2589_v8  ;;  %v94_v6 = vld [vmem:[%s3893_s0 + $0x238] sm:$0xff]  ;;  %v2518_v7 = vcombine.low %v33_v58, %v53_v59  ;;  %v2520_v8 = vcombine.low %v34_v60, %v54_v61  ;;  %v2567_v58 = vcombine.high %v77_v52, %v97_v53  ;;  %v117_v60 = vld [vmem:[%s3893_s0 + $0x2f0] sm:$0xff] }
  0x24   :  { %v2561_v10 = vcombine.high %v74_v5, %v94_v6  ;;  %v137_v61 = vld [vmem:[%s3893_s0 + $0x390] sm:$0xff] }
  0x26   :  { %916 = vmatpush1.bf16.msra.mxu0 %v2586_v13  ;;  %957 = vmatpush1.bf16.msra.mxu1 %v2588_v14  ;;  %v114_v13 = vld [vmem:[%s3893_s0 + $0x2d8] sm:$0xff] }
  0x27   :  { %993 = vmatprep.subr.bf16.mxu0 %v2511_v15  ;;  %1034 = vmatprep.subr.bf16.mxu1 %v2513_v16  ;;  %v134_v14 = vld [vmem:[%s3893_s0 + $0x378] sm:$0xff]  ;;  %v2558_v15 = vcombine.low %v73_v2, %v93_v4  ;;  %v2560_v16 = vcombine.low %v74_v5, %v94_v6  ;;  %v2607_v2 = vcombine.high %v117_v60, %v137_v61  ;;  %v39_v5 = vld [vmem:[%s3893_s0 + $0x80] sm:$0xff] }
  0x28   :  { %v2601_v18 = vcombine.high %v114_v13, %v134_v14  ;;  %v59_v6 = vld [vmem:[%s3893_s0 + $0x120] sm:$0xff] }
  0x29   :  { %2622 = vmatmul.mubr.msk.bf16.vlgmr.msra.gmra.mrb[8].mxu0 %vm743_vm0, %v2799_v35  ;;  %2623 = vmatmul.mubr.msk.bf16.vlgmr.msra.gmra.mrb[8].mxu1 %vm743_vm0, %v2799_v35 }
  0x2a   :  { %994 = vmatpush1.bf16.msra.mxu0 %v2510_v21  ;;  %1035 = vmatpush1.bf16.msra.mxu1 %v2512_v22  ;;  %v36_v21 = vld [vmem:[%s3893_s0 + $0x68] sm:$0xff] }
  0x2b   :  { %995 = vmatprep.subr.bf16.mxu0 %v2551_v23  ;;  %1036 = vmatprep.subr.bf16.mxu1 %v2553_v24  ;;  %v56_v22 = vld [vmem:[%s3893_s0 + $0x108] sm:$0xff]  ;;  %v2598_v23 = vcombine.low %v113_v11, %v133_v12  ;;  %v2600_v24 = vcombine.low %v114_v13, %v134_v14  ;;  %v2531_v11 = vcombine.high %v39_v5, %v59_v6  ;;  %v79_v13 = vld [vmem:[%s3893_s0 + $0x1c0] sm:$0xff] }
  0x2c   :  { %1025 = vmatprep.mubr.bf16.mxu0 %v2701_v3  ;;  %1066 = vmatprep.mubr.bf16.mxu1 %v2701_v3  ;;  %v2525_v26 = vcombine.high %v36_v21, %v56_v22  ;;  %v99_v14 = vld [vmem:[%s3893_s0 + $0x260] sm:$0xff] }
  0x2e   :  { %996 = vmatpush1.bf16.msra.mxu0 %v2550_v29  ;;  %1037 = vmatpush1.bf16.msra.mxu1 %v2552_v30  ;;  %v76_v29 = vld [vmem:[%s3893_s0 + $0x1a8] sm:$0xff] }
  0x2f   :  { %997 = vmatprep.subr.bf16.mxu0 %v2591_v31  ;;  %1038 = vmatprep.subr.bf16.mxu1 %v2593_v32  ;;  %v96_v30 = vld [vmem:[%s3893_s0 + $0x248] sm:$0xff]  ;;  %v2522_v31 = vcombine.low %v35_v19, %v55_v20  ;;  %v2524_v32 = vcombine.low %v36_v21, %v56_v22  ;;  %v2571_v19 = vcombine.high %v79_v13, %v99_v14  ;;  %v119_v21 = vld [vmem:[%s3893_s0 + $0x300] sm:$0xff] }
  0x30   :  { %v2565_v34 = vcombine.high %v76_v29, %v96_v30  ;;  %v139_v22 = vld [vmem:[%s3893_s0 + $0x3a0] sm:$0xff] }
  0x32   :  { %998 = vmatpush1.bf16.msra.mxu0 %v2590_v38  ;;  %1039 = vmatpush1.bf16.msra.mxu1 %v2592_v39  ;;  %v116_v38 = vld [vmem:[%s3893_s0 + $0x2e8] sm:$0xff] }
  0x33   :  { %1075 = vmatprep.subr.bf16.mxu0 %v2515_v40  ;;  %1116 = vmatprep.subr.bf16.mxu1 %v2517_v41  ;;  %v136_v39 = vld [vmem:[%s3893_s0 + $0x388] sm:$0xff]  ;;  %v2562_v40 = vcombine.low %v75_v27, %v95_v28  ;;  %v2564_v41 = vcombine.low %v76_v29, %v96_v30  ;;  %v2611_v27 = vcombine.high %v119_v21, %v139_v22  ;;  %v41_v29 = vld [vmem:[%s3893_s0 + $0x90] sm:$0xff] }
  0x34   :  { %v2605_v43 = vcombine.high %v116_v38, %v136_v39  ;;  %v61_v30 = vld [vmem:[%s3893_s0 + $0x130] sm:$0xff] }
  0x35   :  { %2624 = vmatmul.mubr.msk.bf16.vlgmr.msra.gmra.mrb[12].mxu0 %vm743_vm0, %v2799_v35  ;;  %2625 = vmatmul.mubr.msk.bf16.vlgmr.msra.gmra.mrb[12].mxu1 %vm743_vm0, %v2799_v35 }
  0x36   :  { %1076 = vmatpush1.bf16.msra.mxu0 %v2514_v46  ;;  %1117 = vmatpush1.bf16.msra.mxu1 %v2516_v47  ;;  %v38_v46 = vld [vmem:[%s3893_s0 + $0x78] sm:$0xff] }
  0x37   :  { %1077 = vmatprep.subr.bf16.mxu0 %v2555_v48  ;;  %1118 = vmatprep.subr.bf16.mxu1 %v2557_v49  ;;  %v58_v47 = vld [vmem:[%s3893_s0 + $0x118] sm:$0xff]  ;;  %v2602_v48 = vcombine.low %v115_v36, %v135_v37  ;;  %v2604_v49 = vcombine.low %v116_v38, %v136_v39  ;;  %v2535_v36 = vcombine.high %v41_v29, %v61_v30  ;;  %v81_v38 = vld [vmem:[%s3893_s0 + $0x1d0] sm:$0xff] }
  0x38   :  { %1107 = vmatprep.mubr.bf16.mxu0 %v2701_v3  ;;  %1148 = vmatprep.mubr.bf16.mxu1 %v2701_v3  ;;  %v2529_v51 = vcombine.high %v38_v46, %v58_v47  ;;  %v101_v39 = vld [vmem:[%s3893_s0 + $0x270] sm:$0xff] }
  0x3a   :  { %1078 = vmatpush1.bf16.msra.mxu0 %v2554_v54  ;;  %1119 = vmatpush1.bf16.msra.mxu1 %v2556_v55  ;;  %v78_v54 = vld [vmem:[%s3893_s0 + $0x1b8] sm:$0xff] }
  0x3b   :  { %1079 = vmatprep.subr.bf16.mxu0 %v2595_v56  ;;  %1120 = vmatprep.subr.bf16.mxu1 %v2597_v57  ;;  %v98_v55 = vld [vmem:[%s3893_s0 + $0x258] sm:$0xff]  ;;  %v2526_v56 = vcombine.low %v37_v44, %v57_v45  ;;  %v2528_v57 = vcombine.low %v38_v46, %v58_v47  ;;  %v2575_v44 = vcombine.high %v81_v38, %v101_v39  ;;  %v121_v46 = vld [vmem:[%s3893_s0 + $0x310] sm:$0xff] }
  0x3c   :  { %v2569_v59 = vcombine.high %v78_v54, %v98_v55  ;;  %v141_v47 = vld [vmem:[%s3893_s0 + $0x3b0] sm:$0xff] }
  0x3e   :  { %1080 = vmatpush1.bf16.msra.mxu0 %v2594_v62  ;;  %1121 = vmatpush1.bf16.msra.mxu1 %v2596_v63  ;;  %v118_v62 = vld [vmem:[%s3893_s0 + $0x2f8] sm:$0xff] }
  0x3f   :  { %1157 = vmatprep.subr.bf16.mxu0 %v2519_v0  ;;  %1198 = vmatprep.subr.bf16.mxu1 %v2521_v1  ;;  %v138_v63 = vld [vmem:[%s3893_s0 + $0x398] sm:$0xff]  ;;  %v2566_v0 = vcombine.low %v77_v52, %v97_v53  ;;  %v2568_v1 = vcombine.low %v78_v54, %v98_v55  ;;  %v2615_v52 = vcombine.high %v121_v46, %v141_v47 }
  0x40   :  { %v2609_v4 = vcombine.high %v118_v62, %v138_v63  ;;  %v2614_v54 = vcombine.low %v121_v46, %v141_v47 }
  0x41   :  { %2626 = vmatmul.mubr.msk.bf16.vlgmr.msra.gmra.mrb[16].mxu0 %vm743_vm0, %v2799_v35  ;;  %2627 = vmatmul.mubr.msk.bf16.vlgmr.msra.gmra.mrb[16].mxu1 %vm743_vm0, %v2799_v35 }
  0x42   :  { %1158 = vmatpush1.bf16.msra.mxu0 %v2518_v7  ;;  %1199 = vmatpush1.bf16.msra.mxu1 %v2520_v8  ;;  %v40_v7 = vld [vmem:[%s3893_s0 + $0x88] sm:$0xff] }
  0x43   :  { %1159 = vmatprep.subr.bf16.mxu0 %v2559_v9  ;;  %1200 = vmatprep.subr.bf16.mxu1 %v2561_v10  ;;  %v60_v8 = vld [vmem:[%s3893_s0 + $0x128] sm:$0xff]  ;;  %v2606_v9 = vcombine.low %v117_v60, %v137_v61  ;;  %v2608_v10 = vcombine.low %v118_v62, %v138_v63 }
  0x44   :  { %1189 = vmatprep.mubr.bf16.mxu0 %v2701_v3  ;;  %1230 = vmatprep.mubr.bf16.mxu1 %v2701_v3  ;;  %v2533_v12 = vcombine.high %v40_v7, %v60_v8 }
  0x46   :  { %1160 = vmatpush1.bf16.msra.mxu0 %v2558_v15  ;;  %1201 = vmatpush1.bf16.msra.mxu1 %v2560_v16  ;;  %v80_v15 = vld [vmem:[%s3893_s0 + $0x1c8] sm:$0xff] }
  0x47   :  { %1161 = vmatprep.subr.bf16.mxu0 %v2599_v17  ;;  %1202 = vmatprep.subr.bf16.mxu1 %v2601_v18  ;;  %v100_v16 = vld [vmem:[%s3893_s0 + $0x268] sm:$0xff]  ;;  %v2530_v17 = vcombine.low %v39_v5, %v59_v6  ;;  %v2532_v18 = vcombine.low %v40_v7, %v60_v8 }
  0x48   :  { %v2573_v20 = vcombine.high %v80_v15, %v100_v16 }
  0x4a   :  { %1162 = vmatpush1.bf16.msra.mxu0 %v2598_v23  ;;  %1203 = vmatpush1.bf16.msra.mxu1 %v2600_v24  ;;  %v120_v23 = vld [vmem:[%s3893_s0 + $0x308] sm:$0xff] }
  0x4b   :  { %1239 = vmatprep.subr.bf16.mxu0 %v2523_v25  ;;  %1280 = vmatprep.subr.bf16.mxu1 %v2525_v26  ;;  %v140_v24 = vld [vmem:[%s3893_s0 + $0x3a8] sm:$0xff]  ;;  %v2570_v25 = vcombine.low %v79_v13, %v99_v14  ;;  %v2572_v26 = vcombine.low %v80_v15, %v100_v16 }
  0x4c   :  { %v2613_v28 = vcombine.high %v120_v23, %v140_v24 }
  0x4d   :  { %2628 = vmatmul.mubr.msk.bf16.vlgmr.msra.gmra.mrb[20].mxu0 %vm743_vm0, %v2799_v35  ;;  %2629 = vmatmul.mubr.msk.bf16.vlgmr.msra.gmra.mrb[20].mxu1 %vm743_vm0, %v2799_v35 }
  0x4e   :  { %1240 = vmatpush1.bf16.msra.mxu0 %v2522_v31  ;;  %1281 = vmatpush1.bf16.msra.mxu1 %v2524_v32  ;;  %v42_v31 = vld [vmem:[%s3893_s0 + $0x98] sm:$0xff] }
  0x4f   :  { %1241 = vmatprep.subr.bf16.mxu0 %v2563_v33  ;;  %1282 = vmatprep.subr.bf16.mxu1 %v2565_v34  ;;  %v62_v32 = vld [vmem:[%s3893_s0 + $0x138] sm:$0xff]  ;;  %v2610_v33 = vcombine.low %v119_v21, %v139_v22  ;;  %v2612_v34 = vcombine.low %v120_v23, %v140_v24 }
  0x50   :  { %1271 = vmatprep.mubr.bf16.mxu0 %v2701_v3  ;;  %1312 = vmatprep.mubr.bf16.mxu1 %v2701_v3  ;;  %v2537_v37 = vcombine.high %v42_v31, %v62_v32 }
  0x52   :  { %1242 = vmatpush1.bf16.msra.mxu0 %v2562_v40  ;;  %1283 = vmatpush1.bf16.msra.mxu1 %v2564_v41  ;;  %v82_v40 = vld [vmem:[%s3893_s0 + $0x1d8] sm:$0xff] }
  0x53   :  { %1243 = vmatprep.subr.bf16.mxu0 %v2603_v42  ;;  %1284 = vmatprep.subr.bf16.mxu1 %v2605_v43  ;;  %v102_v41 = vld [vmem:[%s3893_s0 + $0x278] sm:$0xff]  ;;  %v2534_v42 = vcombine.low %v41_v29, %v61_v30  ;;  %v2536_v43 = vcombine.low %v42_v31, %v62_v32 }
  0x54   :  { %v2577_v45 = vcombine.high %v82_v40, %v102_v41 }
  0x56   :  { %1244 = vmatpush1.bf16.msra.mxu0 %v2602_v48  ;;  %1285 = vmatpush1.bf16.msra.mxu1 %v2604_v49  ;;  %v122_v48 = vld [vmem:[%s3893_s0 + $0x318] sm:$0xff] }
  0x57   :  { %1321 = vmatprep.subr.bf16.mxu0 %v2527_v50  ;;  %1362 = vmatprep.subr.bf16.mxu1 %v2529_v51  ;;  %v142_v49 = vld [vmem:[%s3893_s0 + $0x3b8] sm:$0xff]  ;;  %v2574_v50 = vcombine.low %v81_v38, %v101_v39  ;;  %v2576_v51 = vcombine.low %v82_v40, %v102_v41 }
  0x58   :  { %v2617_v53 = vcombine.high %v122_v48, %v142_v49  ;;  %v2616_v55 = vcombine.low %v122_v48, %v142_v49 }
  0x59   :  { %2630 = vmatmul.mubr.msk.bf16.vlgmr.msra.gmra.mrb[24].mxu0 %vm743_vm0, %v2799_v35  ;;  %2631 = vmatmul.mubr.msk.bf16.vlgmr.msra.gmra.mrb[24].mxu1 %vm743_vm0, %v2799_v35 }
  0x5a   :  { %1322 = vmatpush1.bf16.msra.mxu0 %v2526_v56  ;;  %1363 = vmatpush1.bf16.msra.mxu1 %v2528_v57 }
  0x5b   :  { %1323 = vmatprep.subr.bf16.mxu0 %v2567_v58  ;;  %1364 = vmatprep.subr.bf16.mxu1 %v2569_v59 }
  0x5c   :  { %1353 = vmatprep.mubr.bf16.mxu0 %v2701_v3  ;;  %1394 = vmatprep.mubr.bf16.mxu1 %v2701_v3 }
  0x5e   :  { %1324 = vmatpush1.bf16.msra.mxu0 %v2566_v0  ;;  %1365 = vmatpush1.bf16.msra.mxu1 %v2568_v1 }
  0x5f   :  { %1325 = vmatprep.subr.bf16.mxu0 %v2607_v2  ;;  %1366 = vmatprep.subr.bf16.mxu1 %v2609_v4 }
  0x62   :  { %1326 = vmatpush1.bf16.msra.mxu0 %v2606_v9  ;;  %1367 = vmatpush1.bf16.msra.mxu1 %v2608_v10 }
  0x63   :  { %1403 = vmatprep.subr.bf16.mxu0 %v2531_v11  ;;  %1444 = vmatprep.subr.bf16.mxu1 %v2533_v12 }
  0x65   :  { %2632 = vmatmul.mubr.msk.bf16.vlgmr.msra.gmra.mrb[28].mxu0 %vm743_vm0, %v2799_v35  ;;  %2633 = vmatmul.mubr.msk.bf16.vlgmr.msra.gmra.mrb[28].mxu1 %vm743_vm0, %v2799_v35 }
  0x66   :  { %1404 = vmatpush1.bf16.msra.mxu0 %v2530_v17  ;;  %1445 = vmatpush1.bf16.msra.mxu1 %v2532_v18 }
  0x67   :  { %1405 = vmatprep.subr.bf16.mxu0 %v2571_v19  ;;  %1446 = vmatprep.subr.bf16.mxu1 %v2573_v20 }
  0x68   :  { %1435 = vmatprep.mubr.bf16.mxu0 %v2701_v3  ;;  %1476 = vmatprep.mubr.bf16.mxu1 %v2701_v3 }
  0x6a   :  { %1406 = vmatpush1.bf16.msra.mxu0 %v2570_v25  ;;  %1447 = vmatpush1.bf16.msra.mxu1 %v2572_v26 }
  0x6b   :  { %1407 = vmatprep.subr.bf16.mxu0 %v2611_v27  ;;  %1448 = vmatprep.subr.bf16.mxu1 %v2613_v28 }
  0x6e   :  { %1408 = vmatpush1.bf16.msra.mxu0 %v2610_v33  ;;  %1449 = vmatpush1.bf16.msra.mxu1 %v2612_v34 }
  0x6f   :  { %1485 = vmatprep.subr.bf16.mxu0 %v2535_v36  ;;  %1526 = vmatprep.subr.bf16.mxu1 %v2537_v37 }
  0x71   :  { %2634 = vmatmul.mubr.msk.bf16.vlgmr.msra.gmra.mrb[32].mxu0 %vm743_vm0, %v2799_v35  ;;  %2635 = vmatmul.mubr.msk.bf16.vlgmr.msra.gmra.mrb[32].mxu1 %vm743_vm0, %v2799_v35 }
  0x72   :  { %1486 = vmatpush1.bf16.msra.mxu0 %v2534_v42  ;;  %1527 = vmatpush1.bf16.msra.mxu1 %v2536_v43 }
  0x73   :  { %1487 = vmatprep.subr.bf16.mxu0 %v2575_v44  ;;  %1528 = vmatprep.subr.bf16.mxu1 %v2577_v45 }
  0x74   :  { %1517 = vmatprep.mubr.bf16.mxu0 %v2701_v3  ;;  %1558 = vmatprep.mubr.bf16.mxu1 %v2701_v3 }
  0x76   :  { %1488 = vmatpush1.bf16.msra.mxu0 %v2574_v50  ;;  %1529 = vmatpush1.bf16.msra.mxu1 %v2576_v51 }
  0x77   :  { %1489 = vmatprep.subr.bf16.mxu0 %v2615_v52  ;;  %1530 = vmatprep.subr.bf16.mxu1 %v2617_v53 }
  0x7a   :  { %1490 = vmatpush1.bf16.msra.mxu0 %v2614_v54  ;;  %1531 = vmatpush1.bf16.msra.mxu1 %v2616_v55 }
  0x7d   :  { %2636 = vmatmul.mubr.msk.bf16.vlgmr.msra.gmra.mrb[36].mxu0 %vm743_vm0, %v2799_v35  ;;  %2637 = vmatmul.mubr.msk.bf16.vlgmr.msra.gmra.mrb[36].mxu1 %vm743_vm0, %v2799_v35 }
  0xe4   :  { %v3159_v56 = vpop.f32.mrb[0].mxu0  ;;  %v3161_v57 = vpop.f32.mrb[0].mxu1 }
  0xe5   :  { %v3163_v58 = vpop.f32.mrb[1].mxu0  ;;  %v3165_v3 = vpop.f32.mrb[1].mxu1 }
  0xe6   :  { %v785_v59 = vpop.f32.mrb[2].mxu0  ;;  %v1730_v60 = vadd.f32 %v3163_v58, %v3159_v56  ;;  %v826_v61 = vpop.f32.mrb[2].mxu1  ;;  %v1733_v63 = vadd.f32 %v3165_v3, %v3161_v57 }
  0xe7   :  { %v786_v62 = vpop.f32.mrb[3].mxu0  ;;  %v827_v0 = vpop.f32.mrb[3].mxu1 }
  0xe8   :  { %1731 = vadd.xlane.f32.xlu0 %v1730_v60 }
  0xec   :  { %1734 = vadd.xlane.f32.xlu0 %v1733_v63 }
  0xf0   :  { %v3171_v35 = vpop.f32.mrb[4].mxu0  ;;  %v3173_v1 = vpop.f32.mrb[4].mxu1 }
  0xf1   :  { %v3175_v2 = vpop.f32.mrb[5].mxu0  ;;  %v3177_v4 = vpop.f32.mrb[5].mxu1 }
  0xf2   :  { %v867_v5 = vpop.f32.mrb[6].mxu0  ;;  %v1736_v6 = vadd.f32 %v3175_v2, %v3171_v35  ;;  %v908_v7 = vpop.f32.mrb[6].mxu1  ;;  %v1739_v9 = vadd.f32 %v3177_v4, %v3173_v1 }
  0xf3   :  { %v868_v8 = vpop.f32.mrb[7].mxu0  ;;  %v909_v10 = vpop.f32.mrb[7].mxu1 }
  0xf4   :  { %1737 = vadd.xlane.f32.xlu1 %v1736_v6 }
  0xf8   :  { %1740 = vadd.xlane.f32.xlu1 %v1739_v9 }
  0xfc   :  { %v3183_v11 = vpop.f32.mrb[8].mxu0  ;;  %v3185_v12 = vpop.f32.mrb[8].mxu1 }
  0xfd   :  { %v3187_v13 = vpop.f32.mrb[9].mxu0  ;;  %v3189_v14 = vpop.f32.mrb[9].mxu1 }
  0xfe   :  { %v949_v15 = vpop.f32.mrb[10].mxu0  ;;  %v1742_v16 = vadd.f32 %v3187_v13, %v3183_v11  ;;  %v990_v17 = vpop.f32.mrb[10].mxu1  ;;  %v1745_v19 = vadd.f32 %v3189_v14, %v3185_v12 }
  0xff   :  { %v950_v18 = vpop.f32.mrb[11].mxu0  ;;  %v991_v20 = vpop.f32.mrb[11].mxu1 }
 0x100   :  { %1743 = vadd.xlane.f32.xlu0 %v1742_v16  ;;  %1746 = vadd.xlane.f32.xlu1 %v1745_v19 }
 0x108   :  { %v3195_v21 = vpop.f32.mrb[12].mxu0  ;;  %v3197_v22 = vpop.f32.mrb[12].mxu1 }
 0x109   :  { %v3199_v23 = vpop.f32.mrb[13].mxu0  ;;  %v3201_v24 = vpop.f32.mrb[13].mxu1 }
 0x10a   :  { %v1031_v25 = vpop.f32.mrb[14].mxu0  ;;  %v1748_v26 = vadd.f32 %v3199_v23, %v3195_v21  ;;  %v1072_v27 = vpop.f32.mrb[14].mxu1  ;;  %v1751_v29 = vadd.f32 %v3201_v24, %v3197_v22 }
 0x10b   :  { %v1032_v28 = vpop.f32.mrb[15].mxu0  ;;  %v1073_v30 = vpop.f32.mrb[15].mxu1 }
 0x10c   :  { %1749 = vadd.xlane.f32.xlu0 %v1748_v26  ;;  %1752 = vadd.xlane.f32.xlu1 %v1751_v29 }
 0x114   :  { %v3207_v31 = vpop.f32.mrb[16].mxu0  ;;  %v3209_v32 = vpop.f32.mrb[16].mxu1 }
 0x115   :  { %v3211_v33 = vpop.f32.mrb[17].mxu0  ;;  %v3213_v34 = vpop.f32.mrb[17].mxu1 }
 0x116   :  { %v1113_v36 = vpop.f32.mrb[18].mxu0  ;;  %v1754_v37 = vadd.f32 %v3211_v33, %v3207_v31  ;;  %v1154_v38 = vpop.f32.mrb[18].mxu1  ;;  %v1757_v40 = vadd.f32 %v3213_v34, %v3209_v32 }
 0x117   :  { %v1114_v39 = vpop.f32.mrb[19].mxu0  ;;  %v1155_v41 = vpop.f32.mrb[19].mxu1 }
 0x118   :  { %1755 = vadd.xlane.f32.xlu0 %v1754_v37  ;;  %1758 = vadd.xlane.f32.xlu1 %v1757_v40 }
 0x120   :  { %v3219_v42 = vpop.f32.mrb[20].mxu0  ;;  %v3221_v43 = vpop.f32.mrb[20].mxu1 }
 0x121   :  { %v3223_v44 = vpop.f32.mrb[21].mxu0  ;;  %v3225_v45 = vpop.f32.mrb[21].mxu1 }
 0x122   :  { %v1195_v46 = vpop.f32.mrb[22].mxu0  ;;  %v1760_v47 = vadd.f32 %v3223_v44, %v3219_v42  ;;  %v1236_v48 = vpop.f32.mrb[22].mxu1  ;;  %v1763_v50 = vadd.f32 %v3225_v45, %v3221_v43 }
 0x123   :  { %v1196_v49 = vpop.f32.mrb[23].mxu0  ;;  %v1237_v51 = vpop.f32.mrb[23].mxu1 }
 0x124   :  { %1761 = vadd.xlane.f32.xlu0 %v1760_v47  ;;  %1764 = vadd.xlane.f32.xlu1 %v1763_v50 }
 0x12c   :  { %v3231_v52 = vpop.f32.mrb[24].mxu0  ;;  %v3233_v53 = vpop.f32.mrb[24].mxu1 }
 0x12d   :  { %v3235_v54 = vpop.f32.mrb[25].mxu0  ;;  %v3237_v55 = vpop.f32.mrb[25].mxu1 }
 0x12e   :  { %v1277_v59 = vpop.f32.mrb[26].mxu0  ;;  %v1766_v60 = vadd.f32 %v3235_v54, %v3231_v52  ;;  %v1318_v61 = vpop.f32.mrb[26].mxu1  ;;  %v1769_v63 = vadd.f32 %v3237_v55, %v3233_v53 }
 0x12f   :  { %v1278_v62 = vpop.f32.mrb[27].mxu0  ;;  %v1319_v0 = vpop.f32.mrb[27].mxu1 }
 0x130   :  { %1767 = vadd.xlane.f32.xlu0 %v1766_v60  ;;  %1770 = vadd.xlane.f32.xlu1 %v1769_v63 }
 0x138   :  { %v3243_v5 = vpop.f32.mrb[28].mxu0  ;;  %v3245_v6 = vpop.f32.mrb[28].mxu1 }
 0x139   :  { %v3247_v7 = vpop.f32.mrb[29].mxu0  ;;  %v3249_v8 = vpop.f32.mrb[29].mxu1 }
 0x13a   :  { %v1359_v9 = vpop.f32.mrb[30].mxu0  ;;  %v1772_v10 = vadd.f32 %v3247_v7, %v3243_v5  ;;  %v1400_v15 = vpop.f32.mrb[30].mxu1  ;;  %v1775_v17 = vadd.f32 %v3249_v8, %v3245_v6 }
 0x13b   :  { %v1360_v16 = vpop.f32.mrb[31].mxu0  ;;  %v1401_v18 = vpop.f32.mrb[31].mxu1 }
 0x13c   :  { %1773 = vadd.xlane.f32.xlu0 %v1772_v10  ;;  %1776 = vadd.xlane.f32.xlu1 %v1775_v17 }
 0x144   :  { %v3255_v19 = vpop.f32.mrb[32].mxu0  ;;  %v3257_v20 = vpop.f32.mrb[32].mxu1 }
 0x145   :  { %v3259_v25 = vpop.f32.mrb[33].mxu0  ;;  %v3261_v26 = vpop.f32.mrb[33].mxu1 }
 0x146   :  { %v1441_v27 = vpop.f32.mrb[34].mxu0  ;;  %v1778_v28 = vadd.f32 %v3259_v25, %v3255_v19  ;;  %v1482_v29 = vpop.f32.mrb[34].mxu1  ;;  %v1781_v36 = vadd.f32 %v3261_v26, %v3257_v20 }
 0x147   :  { %v1442_v30 = vpop.f32.mrb[35].mxu0  ;;  %v1483_v37 = vpop.f32.mrb[35].mxu1 }
 0x148   :  { %1779 = vadd.xlane.f32.xlu0 %v1778_v28  ;;  %1782 = vadd.xlane.f32.xlu1 %v1781_v36 }
 0x150   :  { %v3267_v38 = vpop.f32.mrb[36].mxu0  ;;  %v3269_v39 = vpop.f32.mrb[36].mxu1 }
 0x151   :  { %v3271_v40 = vpop.f32.mrb[37].mxu0  ;;  %v3273_v41 = vpop.f32.mrb[37].mxu1 }
 0x152   :  { %v1523_v46 = vpop.f32.mrb[38].mxu0  ;;  %v1784_v47 = vadd.f32 %v3271_v40, %v3267_v38  ;;  %v1564_v48 = vpop.f32.mrb[38].mxu1  ;;  %v1787_v50 = vadd.f32 %v3273_v41, %v3269_v39 }
 0x153   :  { %v1524_v49 = vpop.f32.mrb[39].mxu0  ;;  %v1565_v51 = vpop.f32.mrb[39].mxu1 }
 0x154   :  { %1785 = vadd.xlane.f32.xlu0 %v1784_v47  ;;  %1788 = vadd.xlane.f32.xlu1 %v1787_v50 }
 0x175   :  { %v1732_v59 = vpop.xlane.xlu0 %1731 }
 0x179   :  { %v1735_v61 = vpop.xlane.xlu0 %1734 }
 0x17a   :  { %v1790_v62 = vadd.f32 %v1735_v61, %v1732_v59 }
 0x181   :  { %v1738_v60 = vpop.xlane.xlu1 %1737 }
 0x182   :  { %v1791_v0 = vadd.f32 %v1790_v62, %v1738_v60 }
 0x185   :  { %v1741_v63 = vpop.xlane.xlu1 %1740 }
 0x186   :  { %v1792_v10 = vadd.f32 %v1791_v0, %v1741_v63 }
 0x18d   :  { %v1744_v9 = vpop.xlane.xlu0 %1743  ;;  %v1747_v16 = vpop.xlane.xlu1 %1746 }
 0x18e   :  { %v1793_v15 = vadd.f32 %v1792_v10, %v1744_v9 }
 0x190   :  { %v1794_v18 = vadd.f32 %v1793_v15, %v1747_v16 }
 0x199   :  { %v1750_v17 = vpop.xlane.xlu0 %1749  ;;  %v1753_v28 = vpop.xlane.xlu1 %1752 }
 0x19a   :  { %v1795_v27 = vadd.f32 %v1794_v18, %v1750_v17 }
 0x19c   :  { %v1796_v30 = vadd.f32 %v1795_v27, %v1753_v28 }
 0x1a5   :  { %v1756_v29 = vpop.xlane.xlu0 %1755  ;;  %v1759_v37 = vpop.xlane.xlu1 %1758 }
 0x1a6   :  { %v1797_v36 = vadd.f32 %v1796_v30, %v1756_v29 }
 0x1a8   :  { %v1798_v47 = vadd.f32 %v1797_v36, %v1759_v37 }
 0x1b1   :  { %v1762_v46 = vpop.xlane.xlu0 %1761  ;;  %v1765_v49 = vpop.xlane.xlu1 %1764 }
 0x1b2   :  { %v1799_v48 = vadd.f32 %v1798_v47, %v1762_v46 }
 0x1b4   :  { %v1800_v51 = vadd.f32 %v1799_v48, %v1765_v49 }
 0x1bd   :  { %v1768_v50 = vpop.xlane.xlu0 %1767  ;;  %v1771_v60 = vpop.xlane.xlu1 %1770 }
 0x1be   :  { %v1801_v59 = vadd.f32 %v1800_v51, %v1768_v50 }
 0x1c0   :  { %v1802_v62 = vadd.f32 %v1801_v59, %v1771_v60 }
 0x1c9   :  { %v1774_v61 = vpop.xlane.xlu0 %1773  ;;  %v1777_v0 = vpop.xlane.xlu1 %1776 }
 0x1ca   :  { %v1803_v63 = vadd.f32 %v1802_v62, %v1774_v61 }
 0x1cc   :  { %v1804_v10 = vadd.f32 %v1803_v63, %v1777_v0 }
 0x1d5   :  { %v1780_v9 = vpop.xlane.xlu0 %1779  ;;  %v1783_v16 = vpop.xlane.xlu1 %1782 }
 0x1d6   :  { %v1805_v15 = vadd.f32 %v1804_v10, %v1780_v9 }
 0x1d8   :  { %v1806_v17 = vadd.f32 %v1805_v15, %v1783_v16 }
 0x1e1   :  { %v1786_v18 = vpop.xlane.xlu0 %1785  ;;  %v1789_v28 = vpop.xlane.xlu1 %1788 }
 0x1e2   :  { %v1807_v27 = vadd.f32 %v1806_v17, %v1786_v18 }
 0x1e4   :  { %v1808_v29 = vadd.f32 %v1807_v27, %v1789_v28 }
 0x1e6   :  { %v3279_v30 = vmul.f32 0.0001953125, %v1808_v29 }
 0x1e8   :  { %v3283_v36 = vsub.f32 %v3159_v56, %v3279_v30  ;;  %v3287_v37 = vsub.f32 %v3163_v58, %v3279_v30  ;;  %v3291_v46 = vsub.f32 %v3171_v35, %v3279_v30  ;;  %v3295_v47 = vsub.f32 %v3175_v2, %v3279_v30 }
 0x1e9   :  { %v3299_v48 = vsub.f32 %v3161_v57, %v3279_v30  ;;  %v3303_v56 = vsub.f32 %v3165_v3, %v3279_v30  ;;  %v3307_v58 = vsub.f32 %v3173_v1, %v3279_v30  ;;  %v3311_v35 = vsub.f32 %v3177_v4, %v3279_v30 }
 0x1ea   :  { %v1850_v2 = vmul.f32 %v3283_v36, %v3283_v36  ;;  %v1851_v49 = vmul.f32 %v3287_v37, %v3287_v37  ;;  %v1854_v1 = vmul.f32 %v3291_v46, %v3291_v46  ;;  %v1855_v50 = vmul.f32 %v3295_v47, %v3295_v47 }
 0x1eb   :  { %v1852_v57 = vmul.f32 %v3299_v48, %v3299_v48  ;;  %v1853_v3 = vmul.f32 %v3303_v56, %v3303_v56  ;;  %v1856_v51 = vmul.f32 %v3307_v58, %v3307_v58  ;;  %v1857_v59 = vmul.f32 %v3311_v35, %v3311_v35 }
 0x1ec   :  { %v1890_v4 = vadd.f32 %v1851_v49, %v1850_v2  ;;  %v3331_v60 = vsub.f32 %v3185_v12, %v3279_v30  ;;  %v3335_v62 = vsub.f32 %v3189_v14, %v3279_v30  ;;  %v3339_v63 = vsub.f32 %v3183_v11, %v3279_v30 }
 0x1ed   :  { %v1893_v61 = vadd.f32 %v1853_v3, %v1852_v57  ;;  %v3343_v0 = vsub.f32 %v3187_v13, %v3279_v30  ;;  %v1896_v9 = vadd.f32 %v1855_v50, %v1854_v1  ;;  %v3347_v12 = vsub.f32 %v3197_v22, %v3279_v30 }
 0x1ee   :  { %1891 = vadd.xlane.f32.xlu0 %v1890_v4  ;;  %v3351_v10 = vsub.f32 %v3201_v24, %v3279_v30  ;;  %v1858_v14 = vmul.f32 %v3339_v63, %v3339_v63  ;;  %v3359_v13 = vsub.f32 %v3195_v21, %v3279_v30  ;;  %v3363_v15 = vsub.f32 %v3199_v23, %v3279_v30 }
 0x1ef   :  { %1894 = vadd.xlane.f32.xlu1 %v1893_v61  ;;  %3920 = vst [vmem:[#allocation2_spill] sm:$0xff] %v3347_v12  ;;  %v1859_v11 = vmul.f32 %v3343_v0, %v3343_v0  ;;  %v1899_v22 = vadd.f32 %v1857_v59, %v1856_v51  ;;  %v1860_v16 = vmul.f32 %v3331_v60, %v3331_v60 }
 0x1f0   :  { %3921 = vst [vmem:[#allocation3_spill] sm:$0xff] %v3351_v10  ;;  %3922 = vst [vmem:[#allocation4_spill] sm:$0xff] %v3359_v13  ;;  %v1861_v24 = vmul.f32 %v3335_v62, %v3335_v62  ;;  %v1864_v17 = vmul.f32 %v3347_v12, %v3347_v12  ;;  %v3373_v21 = vsub.f32 %v3207_v31, %v3279_v30 }
 0x1f1   :  { %3923 = vst [vmem:[#allocation5_spill] sm:$0xff] %v3363_v15  ;;  %v3377_v23 = vsub.f32 %v3211_v33, %v3279_v30  ;;  %v1902_v18 = vadd.f32 %v1859_v11, %v1858_v14  ;;  %v1865_v27 = vmul.f32 %v3351_v10, %v3351_v10  ;;  %v1862_v28 = vmul.f32 %v3359_v13, %v3359_v13 }
 0x1f2   :  { %1897 = vadd.xlane.f32.xlu0 %v1896_v9  ;;  %3924 = vst [vmem:[#allocation6_spill] sm:$0xff] %v3373_v21  ;;  %v1863_v29 = vmul.f32 %v3363_v15, %v3363_v15  ;;  %v1905_v2 = vadd.f32 %v1861_v24, %v1860_v16  ;;  %v3387_v49 = vsub.f32 %v3209_v32, %v3279_v30 }
 0x1f3   :  { %1900 = vadd.xlane.f32.xlu1 %v1899_v22  ;;  %3925 = vst [vmem:[#allocation7_spill] sm:$0xff] %v3377_v23  ;;  %v3391_v31 = vsub.f32 %v3213_v34, %v3279_v30  ;;  %v1866_v33 = vmul.f32 %v3373_v21, %v3373_v21  ;;  %v1867_v57 = vmul.f32 %v3377_v23, %v3377_v23 }
 0x1f4   :  { %v3399_v3 = vsub.f32 %v3219_v42, %v3279_v30  ;;  %v1911_v1 = vadd.f32 %v1865_v27, %v1864_v17  ;;  %v1908_v50 = vadd.f32 %v1863_v29, %v1862_v28  ;;  %v3403_v32 = vsub.f32 %v3223_v44, %v3279_v30 }
 0x1f5   :  { %v1868_v34 = vmul.f32 %v3387_v49, %v3387_v49  ;;  %v1869_v4 = vmul.f32 %v3391_v31, %v3391_v31  ;;  %v3411_v51 = vsub.f32 %v3221_v43, %v3279_v30  ;;  %v3415_v42 = vsub.f32 %v3225_v45, %v3279_v30 }
 0x1f6   :  { %1903 = vadd.xlane.f32.xlu0 %v1902_v18  ;;  %3926 = vst [vmem:[#allocation8_spill] sm:$0xff] %v3399_v3  ;;  %3927 = vst [vmem:[#allocation9_spill] sm:$0xff] %v3403_v32  ;;  %v1914_v59 = vadd.f32 %v1867_v57, %v1866_v33  ;;  %v1870_v44 = vmul.f32 %v3399_v3, %v3399_v3  ;;  %v3421_v61 = vsub.f32 %v3233_v53, %v3279_v30 }
 0x1f7   :  { %1906 = vadd.xlane.f32.xlu1 %v1905_v2  ;;  %v1871_v9 = vmul.f32 %v3403_v32, %v3403_v32  ;;  %v3427_v43 = vsub.f32 %v3237_v55, %v3279_v30  ;;  %v3431_v45 = vsub.f32 %v3231_v52, %v3279_v30  ;;  %v3435_v14 = vsub.f32 %v3235_v54, %v3279_v30 }
 0x1f8   :  { %v1917_v11 = vadd.f32 %v1869_v4, %v1868_v34  ;;  %v1872_v53 = vmul.f32 %v3411_v51, %v3411_v51  ;;  %v1873_v22 = vmul.f32 %v3415_v42, %v3415_v42  ;;  %v3443_v55 = vsub.f32 %v3269_v39, %v3279_v30 }
 0x1f9   :  { %3928 = vst [vmem:[#allocation10_spill] sm:$0xff] %v3431_v45  ;;  %3929 = vst [vmem:[#allocation11_spill] sm:$0xff] %v3435_v14  ;;  %v3447_v52 = vsub.f32 %v3273_v41, %v3279_v30  ;;  %v1876_v54 = vmul.f32 %v3421_v61, %v3421_v61  ;;  %v3453_v16 = vsub.f32 %v3243_v5, %v3279_v30 }
 0x1fa   :  { %1909 = vadd.xlane.f32.xlu0 %v1908_v50  ;;  %3930 = vst [vmem:[#allocation12_spill] sm:$0xff] %v3443_v55  ;;  %v3457_v24 = vsub.f32 %v3247_v7, %v3279_v30  ;;  %v1920_v17 = vadd.f32 %v1871_v9, %v1870_v44  ;;  %v1877_v39 = vmul.f32 %v3427_v43, %v3427_v43 }
 0x1fb   :  { %1912 = vadd.xlane.f32.xlu1 %v1911_v1  ;;  %3931 = vst [vmem:[#allocation13_spill] sm:$0xff] %v3447_v52  ;;  %3932 = vst [vmem:[#allocation14_spill] sm:$0xff] %v3453_v16  ;;  %v1874_v41 = vmul.f32 %v3431_v45, %v3431_v45  ;;  %v1875_v18 = vmul.f32 %v3435_v14, %v3435_v14  ;;  %v1923_v27 = vadd.f32 %v1873_v22, %v1872_v53 }
 0x1fc   :  { %3933 = vst [vmem:[#allocation15_spill] sm:$0xff] %v3457_v24  ;;  %v3467_v28 = vsub.f32 %v3245_v6, %v3279_v30  ;;  %v3471_v5 = vsub.f32 %v3249_v8, %v3279_v30  ;;  %v1878_v7 = vmul.f32 %v3453_v16, %v3453_v16  ;;  %v1879_v29 = vmul.f32 %v3457_v24, %v3457_v24 }
 0x1fd   :  { %v1929_v2 = vadd.f32 %v1877_v39, %v1876_v54  ;;  %v1926_v33 = vadd.f32 %v1875_v18, %v1874_v41  ;;  %v3479_v57 = vsub.f32 %v3255_v19, %v3279_v30  ;;  %v3483_v6 = vsub.f32 %v3259_v25, %v3279_v30  ;;  %v3525_v54 = vld [vmem:[%s3895_s3] sm:$0xff] }
 0x1fe   :  { %1915 = vadd.xlane.f32.xlu0 %v1914_v59  ;;  %3934 = vst [vmem:[#allocation16_spill] sm:$0xff] %v3471_v5  ;;  %v1880_v8 = vmul.f32 %v3467_v28, %v3467_v28  ;;  %v1881_v1 = vmul.f32 %v3471_v5, %v3471_v5  ;;  %v3491_v50 = vsub.f32 %v3257_v20, %v3279_v30  ;;  %v3532_v39 = vld [vmem:[%s3896_s4 + $0x2] ss:$0 sm:$0xff]  ;;  %v3539_v18 = vld [vmem:[%s3896_s4 + $0x4] ss:$0 sm:$0xff] }
 0x1ff   :  { %1918 = vadd.xlane.f32.xlu1 %v1917_v11  ;;  %3935 = vst [vmem:[#allocation17_spill] sm:$0xff] %v3479_v57  ;;  %3936 = vst [vmem:[#allocation18_spill] sm:$0xff] %v3483_v6  ;;  %v3495_v34 = vsub.f32 %v3261_v26, %v3279_v30  ;;  %v1932_v19 = vadd.f32 %v1879_v29, %v1878_v7  ;;  %v1882_v25 = vmul.f32 %v3479_v57, %v3479_v57  ;;  %v3546_v7 = vld [vmem:[%s3896_s4 + $0x6] ss:$0 sm:$0xff] }
 0x200   :  { %3937 = vst [vmem:[#allocation19_spill] sm:$0xff] %v3491_v50  ;;  %v1883_v4 = vmul.f32 %v3483_v6, %v3483_v6  ;;  %v3503_v59 = vsub.f32 %v3267_v38, %v3279_v30  ;;  %v3507_v20 = vsub.f32 %v3271_v40, %v3279_v30  ;;  %v1935_v44 = vadd.f32 %v1881_v1, %v1880_v8  ;;  %v3520_v30 = vld [vmem:[%s3896_s4] ss:$0 sm:$0xff]  ;;  %v3560_v8 = vld [vmem:[%s3896_s4 + $0xa] ss:$0 sm:$0xff] }
 0x201   :  { %3938 = vst [vmem:[#allocation20_spill] sm:$0xff] %v3495_v34  ;;  %v1884_v26 = vmul.f32 %v3491_v50, %v3491_v50  ;;  %v1885_v9 = vmul.f32 %v3495_v34, %v3495_v34  ;;  %v2277_v41 = vmul.f32 %v3532_v39, %v3525_v54  ;;  %v2281_v29 = vmul.f32 %v3546_v7, %v3525_v54 }
 0x202   :  { %1921 = vadd.xlane.f32.xlu0 %v1920_v17  ;;  %3939 = vst [vmem:[#allocation21_spill] sm:$0xff] %v3503_v59  ;;  %3940 = vst [vmem:[#allocation22_spill] sm:$0xff] %v3507_v20  ;;  %v1938_v11 = vadd.f32 %v1883_v4, %v1882_v25  ;;  %v1886_v53 = vmul.f32 %v3503_v59, %v3503_v59  ;;  %v1887_v38 = vmul.f32 %v3507_v20, %v3507_v20  ;;  %v3574_v4 = vld [vmem:[%s3896_s4 + $0x1] ss:$0 sm:$0xff] }
 0x203   :  { %1924 = vadd.xlane.f32.xlu1 %v1923_v27  ;;  %v1941_v22 = vadd.f32 %v1885_v9, %v1884_v26  ;;  %v2275_v17 = vmul.f32 %v3520_v30, %v3525_v54  ;;  %v2279_v27 = vmul.f32 %v3539_v18, %v3525_v54  ;;  %v2285_v1 = vmul.f32 %v3560_v8, %v3525_v54 }
 0x204   :  { %v1944_v40 = vadd.f32 %v1887_v38, %v1886_v53  ;;  %v2276_v26 = vmul.f32 %v3574_v4, %v3525_v54  ;;  %v3595_v38 = vld [vmem:[%s3896_s4 + $0x7] ss:$0 sm:$0xff] }
 0x206   :  { %1927 = vadd.xlane.f32.xlu0 %v1926_v33 }
 0x207   :  { %1930 = vadd.xlane.f32.xlu1 %v1929_v2  ;;  %v3553_v2 = vld [vmem:[%s3896_s4 + $0x8] ss:$0 sm:$0xff] }
 0x208   :  { %v2283_v33 = vmul.f32 %v3553_v2, %v3525_v54 }
 0x20a   :  { %1933 = vadd.xlane.f32.xlu0 %v1932_v19  ;;  %v3567_v19 = vld [vmem:[%s3896_s4 + $0xc] ss:$0 sm:$0xff] }
 0x20b   :  { %1936 = vadd.xlane.f32.xlu1 %v1935_v44  ;;  %v2287_v25 = vmul.f32 %v3567_v19, %v3525_v54  ;;  %v3579_v44 = vld [vmem:[%s3896_s4 + $0x3] ss:$0 sm:$0xff] }
 0x20c   :  { %v2278_v9 = vmul.f32 %v3579_v44, %v3525_v54 }
 0x20e   :  { %1939 = vadd.xlane.f32.xlu0 %v1938_v11  ;;  %v3588_v11 = vld [vmem:[%s3896_s4 + $0x5] ss:$0 sm:$0xff] }
 0x20f   :  { %1942 = vadd.xlane.f32.xlu1 %v1941_v22  ;;  %v2280_v53 = vmul.f32 %v3588_v11, %v3525_v54  ;;  %v2282_v22 = vmul.f32 %v3595_v38, %v3525_v54 }
 0x212   :  { %1945 = vadd.xlane.f32.xlu0 %v1944_v40  ;;  %v3602_v40 = vld [vmem:[%s3896_s4 + $0x9] ss:$0 sm:$0xff] }
 0x220   :  { %2297 = vperm.xlu1 %2697, %v2275_v17   ;;  %v2284_v17 = vmul.f32 %v3602_v40, %v3525_v54 }
 0x224   :  { %2307 = vperm.xlu1 %2697, %v2277_v41   ;;  %v3609_v41 = vld [vmem:[%s3896_s4 + $0xb] ss:$0 sm:$0xff] }
 0x228   :  { %2317 = vperm.xlu1 %2697, %v2279_v27   ;;  %2302 = vperm.xlu0 %2698, %v2276_v26   ;;  %v2286_v27 = vmul.f32 %v3609_v41, %v3525_v54 }
 0x22c   :  { %2327 = vperm.xlu1 %2697, %v2281_v29   ;;  %2312 = vperm.xlu0 %2698, %v2278_v9   ;;  %v1888_v29 = vmul.f32 %v3443_v55, %v3443_v55  ;;  %v3627_v9 = vld [vmem:[%s3896_s4 + $0x10] ss:$0 sm:$0xff] }
 0x230   :  { %2337 = vperm.xlu1 %2697, %v2283_v33   ;;  %2322 = vperm.xlu0 %2698, %v2280_v53   ;;  %v1889_v33 = vmul.f32 %v3447_v52, %v3447_v52  ;;  %v2291_v53 = vmul.f32 %v3627_v9, %v3525_v54 }
 0x234   :  { %2347 = vperm.xlu1 %2697, %v2285_v1   ;;  %2332 = vperm.xlu0 %2698, %v2282_v22   ;;  %v1947_v1 = vadd.f32 %v1889_v33, %v1888_v29  ;;  %v3634_v22 = vld [vmem:[%s3896_s4 + $0xd] ss:$0 sm:$0xff]  ;;  %v3648_v33 = vld [vmem:[%s3896_s4 + $0x11] ss:$0 sm:$0xff] }
 0x238   :  { %2357 = vperm.xlu1 %2697, %v2287_v25   ;;  %2342 = vperm.xlu0 %2698, %v2284_v17   ;;  %v3620_v25 = vld [vmem:[%s3896_s4 + $0xe] ss:$0 sm:$0xff]  ;;  %v3639_v17 = vld [vmem:[%s3896_s4 + $0xf] ss:$0 sm:$0xff] }
 0x239   :  { %v2289_v26 = vmul.f32 %v3620_v25, %v3525_v54  ;;  %v2290_v29 = vmul.f32 %v3639_v17, %v3525_v54 }
 0x23c   :  { %2352 = vperm.xlu0 %2698, %v2286_v27   ;;  %v2288_v27 = vmul.f32 %v3634_v22, %v3525_v54 }
 0x240   :  { %2362 = vperm.xlu0 %2698, %v2288_v27  }
 0x244   :  { %2372 = vperm.xlu0 %2698, %v2290_v29  }
 0x25c   :  { %1948 = vadd.xlane.f32.xlu1 %v1947_v1  ;;  %v2292_v1 = vmul.f32 %v3648_v33, %v3525_v54 }
 0x25e   :  { %2382 = vperm.xlu0 %2698, %v2292_v1  }
 0x26d   :  { %2367 = vperm.xlu1 %2697, %v2289_v26  }
 0x271   :  { %2377 = vperm.xlu1 %2697, %v2291_v53  }
 0x27b   :  { %v1892_v6 = vpop.xlane.xlu0 %1891 }
 0x27c   :  { %v1895_v26 = vpop.xlane.xlu1 %1894 }
 0x27d   :  { %v1950_v24 = vadd.f32 %v1895_v26, %v1892_v6 }
 0x27f   :  { %v1898_v27 = vpop.xlane.xlu0 %1897 }
 0x280   :  { %v1901_v53 = vpop.xlane.xlu1 %1900  ;;  %v1951_v16 = vadd.f32 %v1950_v24, %v1898_v27 }
 0x282   :  { %v1952_v45 = vadd.f32 %v1951_v16, %v1901_v53 }
 0x283   :  { %v1904_v32 = vpop.xlane.xlu0 %1903 }
 0x284   :  { %v1907_v20 = vpop.xlane.xlu1 %1906  ;;  %v1953_v23 = vadd.f32 %v1952_v45, %v1904_v32 }
 0x286   :  { %v1954_v21 = vadd.f32 %v1953_v23, %v1907_v20 }
 0x287   :  { %v1910_v29 = vpop.xlane.xlu0 %1909 }
 0x288   :  { %v1913_v59 = vpop.xlane.xlu1 %1912  ;;  %v1955_v55 = vadd.f32 %v1954_v21, %v1910_v29 }
 0x28a   :  { %v1956_v1 = vadd.f32 %v1955_v55, %v1913_v59 }
 0x28b   :  { %v1916_v12 = vpop.xlane.xlu0 %1915 }
 0x28c   :  { %v1919_v57 = vpop.xlane.xlu1 %1918  ;;  %v1957_v34 = vadd.f32 %v1956_v1, %v1916_v12 }
 0x28e   :  { %v1958_v15 = vadd.f32 %v1957_v34, %v1919_v57 }
 0x28f   :  { %v1922_v13 = vpop.xlane.xlu0 %1921 }
 0x290   :  { %v1925_v14 = vpop.xlane.xlu1 %1924  ;;  %v1959_v24 = vadd.f32 %v1958_v15, %v1922_v13 }
 0x292   :  { %v1960_v6 = vadd.f32 %v1959_v24, %v1925_v14 }
 0x293   :  { %v1928_v16 = vpop.xlane.xlu0 %1927 }
 0x294   :  { %v1931_v3 = vpop.xlane.xlu1 %1930  ;;  %v1961_v32 = vadd.f32 %v1960_v6, %v1928_v16 }
 0x296   :  { %v1962_v45 = vadd.f32 %v1961_v32, %v1931_v3  ;;  %v1970_v3 = vld [vmem:[%s3897_s2] sm:$0xff] }
 0x297   :  { %v1934_v21 = vpop.xlane.xlu0 %1933 }
 0x298   :  { %v1937_v52 = vpop.xlane.xlu1 %1936  ;;  %v1963_v20 = vadd.f32 %v1962_v45, %v1934_v21 }
 0x29a   :  { %v1964_v12 = vadd.f32 %v1963_v20, %v1937_v52 }
 0x29b   :  { %v1940_v59 = vpop.xlane.xlu0 %1939 }
 0x29c   :  { %v1943_v10 = vpop.xlane.xlu1 %1942  ;;  %v1965_v57 = vadd.f32 %v1964_v12, %v1940_v59 }
 0x29e   :  { %v1966_v34 = vadd.f32 %v1965_v57, %v1943_v10  ;;  %v2694_v57 = vld [vmem:[%s3896_s4 + $0x12] ss:$0 sm:$0xff] }
 0x29f   :  { %v1946_v27 = vpop.xlane.xlu0 %1945 }
 0x2a0   :  { %v3652_v50 = vpop.permute.xlu1 %2297  ;;  %v1967_v15 = vadd.f32 %v1966_v34, %v1946_v27 }
 0x2a4   :  { %v3654_v5 = vpop.permute.xlu1 %2307 }
 0x2a8   :  { %v3656_v26 = vpop.permute.xlu1 %2317 }
 0x2ac   :  { %v3658_v23 = vpop.permute.xlu1 %2327 }
 0x2b0   :  { %v3660_v55 = vpop.permute.xlu1 %2337 }
 0x2b4   :  { %v3662_v53 = vpop.permute.xlu1 %2347 }
 0x2b8   :  { %v3664_v13 = vpop.permute.xlu1 %2357 }
 0x2e9   :  { %v1949_v14 = vpop.xlane.xlu1 %1948 }
 0x2ea   :  { %v1968_v29 = vadd.f32 %v1967_v15, %v1949_v14 }
 0x2ec   :  { %v1969_v1 = vmul.f32 0.0001953125, %v1968_v29 }
 0x2ee   :  { %v1971_v24 = vadd.f32 1e-05, %v1969_v1 }
 0x2f0   :  { %2699 = vrsqrt.f32 %v1971_v24 }
 0x2fa   :  { %v2700_v6 = vpop.eup %2699 }
 0x2fb   :  { %v1973_v52 = vmul.f32 %v2700_v6, %v1970_v3 }
 0x2fd   :  { %v2115_v16 = vmul.f32 %v3574_v4, %v1973_v52  ;;  %v2114_v32 = vmul.f32 %v3520_v30, %v1973_v52  ;;  %v2116_v10 = vmul.f32 %v3532_v39, %v1973_v52  ;;  %v2123_v45 = vmul.f32 %v3602_v40, %v1973_v52 }
 0x2fe   :  { %v2117_v21 = vmul.f32 %v3579_v44, %v1973_v52  ;;  %v2125_v20 = vmul.f32 %v3609_v41, %v1973_v52  ;;  %v2118_v12 = vmul.f32 %v3539_v18, %v1973_v52  ;;  %v2127_v4 = vmul.f32 %v3634_v22, %v1973_v52  ;;  %v2695_v41 = vld [vmem:[%s3896_s4 + $0x13] ss:$0 sm:$0xff] }
 0x2ff   :  { %2141 = vperm.xlu1 %2697, %v2115_v16   ;;  %2136 = vperm.xlu0 %2698, %v2114_v32   ;;  %v2119_v30 = vmul.f32 %v3588_v11, %v1973_v52  ;;  %v2129_v39 = vmul.f32 %v3639_v17, %v1973_v52  ;;  %v2120_v40 = vmul.f32 %v3546_v7, %v1973_v52 }
 0x300   :  { %v2131_v44 = vmul.f32 %v3648_v33, %v1973_v52  ;;  %v2121_v18 = vmul.f32 %v3595_v38, %v1973_v52  ;;  %v2133_v22 = vmul.f32 %v2695_v41, %v1973_v52  ;;  %v2294_v11 = vmul.f32 %v2695_v41, %v3525_v54 }
 0x301   :  { %v2122_v17 = vmul.f32 %v3553_v2, %v1973_v52  ;;  %v2124_v7 = vmul.f32 %v3560_v8, %v1973_v52  ;;  %v2126_v33 = vmul.f32 %v3567_v19, %v1973_v52  ;;  %v2128_v59 = vmul.f32 %v3620_v25, %v1973_v52  ;;  %v2303_v8 = vpop.permute.xlu0 %2302 }
 0x302   :  { %v2130_v38 = vmul.f32 %v3627_v9, %v1973_v52  ;;  %v2132_v34 = vmul.f32 %v2694_v57, %v1973_v52  ;;  %v2293_v2 = vmul.f32 %v2694_v57, %v3525_v54  ;;  %v3699_v9 = vpop.permute.xlu1 %2367 }
 0x303   :  { %2146 = vperm.xlu1 %2697, %v2116_v10   ;;  %2181 = vperm.xlu0 %2698, %v2123_v45  }
 0x305   :  { %v2313_v27 = vpop.permute.xlu0 %2312 }
 0x306   :  { %v3703_v24 = vpop.permute.xlu1 %2377 }
 0x307   :  { %2151 = vperm.xlu1 %2697, %v2117_v21   ;;  %2191 = vperm.xlu0 %2698, %v2125_v20  }
 0x309   :  { %v3695_v15 = vpop.permute.xlu0 %2322 }
 0x30b   :  { %2156 = vperm.xlu1 %2697, %v2118_v12   ;;  %2201 = vperm.xlu0 %2698, %v2127_v4  }
 0x30d   :  { %v3697_v19 = vpop.permute.xlu0 %2332 }
 0x30f   :  { %2161 = vperm.xlu1 %2697, %v2119_v30   ;;  %2211 = vperm.xlu0 %2698, %v2129_v39  }
 0x311   :  { %v2343_v25 = vpop.permute.xlu0 %2342 }
 0x313   :  { %2166 = vperm.xlu1 %2697, %v2120_v40   ;;  %2221 = vperm.xlu0 %2698, %v2131_v44  }
 0x315   :  { %v2353_v14 = vpop.permute.xlu0 %2352 }
 0x317   :  { %2171 = vperm.xlu1 %2697, %v2121_v18   ;;  %2231 = vperm.xlu0 %2698, %v2133_v22  }
 0x319   :  { %v2363_v29 = vpop.permute.xlu0 %2362 }
 0x31b   :  { %2176 = vperm.xlu1 %2697, %v2122_v17   ;;  %2392 = vperm.xlu0 %2698, %v2294_v11  }
 0x31d   :  { %v3701_v1 = vpop.permute.xlu0 %2372 }
 0x31f   :  { %2186 = vperm.xlu1 %2697, %v2124_v7  }
 0x321   :  { %v3705_v3 = vpop.permute.xlu0 %2382 }
 0x323   :  { %2196 = vperm.xlu1 %2697, %v2126_v33  }
 0x327   :  { %2206 = vperm.xlu1 %2697, %v2128_v59  }
 0x32b   :  { %2216 = vperm.xlu1 %2697, %v2130_v38  }
 0x32f   :  { %2226 = vperm.xlu1 %2697, %v2132_v34  }
 0x333   :  { %2387 = vperm.xlu1 %2697, %v2293_v2  }
 0x37e   :  { %v2142_v6 = vpop.permute.xlu1 %2141  ;;  %v2137_v54 = vpop.permute.xlu0 %2136 }
 0x37f   :  { %v2236_v52 = vmul.f32 %v2142_v6, %v3299_v48  ;;  %v2237_v16 = vmul.f32 %v2142_v6, %v3303_v56  ;;  %v2234_v32 = vmul.f32 %v2137_v54, %v3283_v36  ;;  %v2235_v10 = vmul.f32 %v2137_v54, %v3287_v37 }
 0x381   :  { %v2397_v45 = vadd.f32 %v2303_v8, %v2236_v52  ;;  %v2398_v21 = vadd.f32 %v2303_v8, %v2237_v16  ;;  %v2395_v20 = vadd.f32 %v3652_v50, %v2234_v32  ;;  %v2396_v12 = vadd.f32 %v3652_v50, %v2235_v10  ;;  %v3945_v16 = vld [vmem:[#allocation20_spill] sm:$0xff] }
 0x382   :  { %v2147_v4 = vpop.permute.xlu1 %2146  ;;  %v2182_v30 = vpop.permute.xlu0 %2181 }
 0x383   :  { %2437 = vst [vmem:[%s3898_s5 + $0x10] sm:$0xff] %v2397_v45  ;;  %2438 = vst [vmem:[%s3898_s5 + $0x18] sm:$0xff] %v2398_v21  ;;  %v2238_v36 = vmul.f32 %v2147_v4, %v3291_v46  ;;  %v2239_v37 = vmul.f32 %v2147_v4, %v3295_v47  ;;  %v2252_v48 = vmul.f32 %v2182_v30, %v3387_v49 }
 0x384   :  { %2435 = vst [vmem:[%s3898_s5] sm:$0xff] %v2395_v20  ;;  %2436 = vst [vmem:[%s3898_s5 + $0x8] sm:$0xff] %v2396_v12  ;;  %v2253_v56 = vmul.f32 %v2182_v30, %v3391_v31  ;;  %v3947_v30 = vld [vmem:[#allocation3_spill] sm:$0xff] }
 0x385   :  { %v2399_v50 = vadd.f32 %v3654_v5, %v2238_v36  ;;  %v2400_v39 = vadd.f32 %v3654_v5, %v2239_v37  ;;  %v2413_v40 = vadd.f32 %v2343_v25, %v2252_v48 }
 0x386   :  { %v2414_v44 = vadd.f32 %v2343_v25, %v2253_v56  ;;  %v2152_v41 = vpop.permute.xlu1 %2151  ;;  %v2192_v18 = vpop.permute.xlu0 %2191  ;;  %v3948_v56 = vld [vmem:[#allocation12_spill] sm:$0xff] }
 0x387   :  { %2439 = vst [vmem:[%s3898_s5 + $0x20] sm:$0xff] %v2399_v50  ;;  %2440 = vst [vmem:[%s3898_s5 + $0x28] sm:$0xff] %v2400_v39  ;;  %v2240_v46 = vmul.f32 %v2152_v41, %v3307_v58  ;;  %v2241_v47 = vmul.f32 %v2152_v41, %v3311_v35  ;;  %v2256_v49 = vmul.f32 %v2192_v18, %v3411_v51  ;;  %v3949_v39 = vld [vmem:[#allocation13_spill] sm:$0xff] }
 0x388   :  { %2453 = vst [vmem:[%s3898_s5 + $0x90] sm:$0xff] %v2413_v40  ;;  %2454 = vst [vmem:[%s3898_s5 + $0x98] sm:$0xff] %v2414_v44  ;;  %v2257_v31 = vmul.f32 %v2192_v18, %v3415_v42  ;;  %v3950_v18 = vld [vmem:[#allocation6_spill] sm:$0xff] }
 0x389   :  { %v2401_v5 = vadd.f32 %v2313_v27, %v2240_v46  ;;  %v2402_v22 = vadd.f32 %v2313_v27, %v2241_v47  ;;  %v2417_v11 = vadd.f32 %v2353_v14, %v2256_v49  ;;  %v3951_v47 = vld [vmem:[#allocation7_spill] sm:$0xff] }
 0x38a   :  { %v2418_v17 = vadd.f32 %v2353_v14, %v2257_v31  ;;  %v2157_v7 = vpop.permute.xlu1 %2156  ;;  %v2202_v33 = vpop.permute.xlu0 %2201 }
 0x38b   :  { %2441 = vst [vmem:[%s3898_s5 + $0x30] sm:$0xff] %v2401_v5  ;;  %2442 = vst [vmem:[%s3898_s5 + $0x38] sm:$0xff] %v2402_v22  ;;  %v2242_v58 = vmul.f32 %v2157_v7, %v3339_v63  ;;  %v2243_v35 = vmul.f32 %v2157_v7, %v3343_v0  ;;  %v2260_v51 = vmul.f32 %v2202_v33, %v3421_v61 }
 0x38c   :  { %2457 = vst [vmem:[%s3898_s5 + $0xb0] sm:$0xff] %v2417_v11  ;;  %2458 = vst [vmem:[%s3898_s5 + $0xb8] sm:$0xff] %v2418_v17  ;;  %v2261_v42 = vmul.f32 %v2202_v33, %v3427_v43  ;;  %v3941_v43 = vld [vmem:[#allocation16_spill] sm:$0xff] }
 0x38d   :  { %v2403_v59 = vadd.f32 %v3656_v26, %v2242_v58  ;;  %v2404_v38 = vadd.f32 %v3656_v26, %v2243_v35  ;;  %v2421_v57 = vadd.f32 %v2363_v29, %v2260_v51  ;;  %v3952_v17 = vld [vmem:[#allocation8_spill] sm:$0xff] }
 0x38e   :  { %v2422_v34 = vadd.f32 %v2363_v29, %v2261_v42  ;;  %v2162_v2 = vpop.permute.xlu1 %2161  ;;  %v2212_v8 = vpop.permute.xlu0 %2211  ;;  %v3954_v42 = vld [vmem:[#allocation10_spill] sm:$0xff] }
 0x38f   :  { %2443 = vst [vmem:[%s3898_s5 + $0x40] sm:$0xff] %v2403_v59  ;;  %2444 = vst [vmem:[%s3898_s5 + $0x48] sm:$0xff] %v2404_v38  ;;  %v2244_v63 = vmul.f32 %v2162_v2, %v3331_v60  ;;  %v2245_v0 = vmul.f32 %v2162_v2, %v3335_v62  ;;  %v2264_v61 = vmul.f32 %v2212_v8, %v3467_v28  ;;  %v3942_v60 = vld [vmem:[#allocation4_spill] sm:$0xff]  ;;  %v3943_v28 = vld [vmem:[#allocation5_spill] sm:$0xff] }
 0x390   :  { %2461 = vst [vmem:[%s3898_s5 + $0xd0] sm:$0xff] %v2421_v57  ;;  %2462 = vst [vmem:[%s3898_s5 + $0xd8] sm:$0xff] %v2422_v34  ;;  %v2265_v26 = vmul.f32 %v2212_v8, %v3941_v43  ;;  %v3955_v38 = vld [vmem:[#allocation11_spill] sm:$0xff] }
 0x391   :  { %v2405_v27 = vadd.f32 %v3695_v15, %v2244_v63  ;;  %v2406_v25 = vadd.f32 %v3695_v15, %v2245_v0  ;;  %v2425_v14 = vadd.f32 %v3701_v1, %v2264_v61  ;;  %v3957_v0 = vld [vmem:[#allocation15_spill] sm:$0xff] }
 0x392   :  { %v2426_v29 = vadd.f32 %v3701_v1, %v2265_v26  ;;  %v2167_v6 = vpop.permute.xlu1 %2166  ;;  %v2222_v54 = vpop.permute.xlu0 %2221  ;;  %v3944_v1 = vld [vmem:[#allocation19_spill] sm:$0xff] }
 0x393   :  { %2445 = vst [vmem:[%s3898_s5 + $0x50] sm:$0xff] %v2405_v27  ;;  %2446 = vst [vmem:[%s3898_s5 + $0x58] sm:$0xff] %v2406_v25  ;;  %v2246_v62 = vmul.f32 %v2167_v6, %v3942_v60  ;;  %v2247_v15 = vmul.f32 %v2167_v6, %v3943_v28  ;;  %v2268_v52 = vmul.f32 %v2222_v54, %v3944_v1  ;;  %v3961_v28 = vld [vmem:[#allocation22_spill] sm:$0xff] }
 0x394   :  { %2465 = vst [vmem:[%s3898_s5 + $0xf0] sm:$0xff] %v2425_v14  ;;  %2466 = vst [vmem:[%s3898_s5 + $0xf8] sm:$0xff] %v2426_v29  ;;  %v2269_v32 = vmul.f32 %v2222_v54, %v3945_v16  ;;  %v3959_v14 = vld [vmem:[#allocation18_spill] sm:$0xff] }
 0x395   :  { %v2407_v10 = vadd.f32 %v3658_v23, %v2246_v62  ;;  %v2408_v45 = vadd.f32 %v3658_v23, %v2247_v15  ;;  %v2429_v21 = vadd.f32 %v3705_v3, %v2268_v52  ;;  %v3946_v23 = vld [vmem:[#allocation2_spill] sm:$0xff] }
 0x396   :  { %v2430_v20 = vadd.f32 %v3705_v3, %v2269_v32  ;;  %v2172_v12 = vpop.permute.xlu1 %2171  ;;  %v2232_v4 = vpop.permute.xlu0 %2231 }
 0x397   :  { %2447 = vst [vmem:[%s3898_s5 + $0x60] sm:$0xff] %v2407_v10  ;;  %2448 = vst [vmem:[%s3898_s5 + $0x68] sm:$0xff] %v2408_v45  ;;  %v2248_v3 = vmul.f32 %v2172_v12, %v3946_v23  ;;  %v2249_v36 = vmul.f32 %v2172_v12, %v3947_v30  ;;  %v2272_v50 = vmul.f32 %v2232_v4, %v3948_v56 }
 0x398   :  { %2469 = vst [vmem:[%s3898_s5 + $0x110] sm:$0xff] %v2429_v21  ;;  %2470 = vst [vmem:[%s3898_s5 + $0x118] sm:$0xff] %v2430_v20  ;;  %v2273_v40 = vmul.f32 %v2232_v4, %v3949_v39 }
 0x399   :  { %v2409_v37 = vadd.f32 %v3697_v19, %v2248_v3  ;;  %v2410_v48 = vadd.f32 %v3697_v19, %v2249_v36 }
 0x39a   :  { %v2177_v44 = vpop.permute.xlu1 %2176  ;;  %v2393_v41 = vpop.permute.xlu0 %2392 }
 0x39b   :  { %2449 = vst [vmem:[%s3898_s5 + $0x70] sm:$0xff] %v2409_v37  ;;  %2450 = vst [vmem:[%s3898_s5 + $0x78] sm:$0xff] %v2410_v48  ;;  %v2250_v46 = vmul.f32 %v2177_v44, %v3950_v18  ;;  %v2251_v49 = vmul.f32 %v2177_v44, %v3951_v47  ;;  %v2433_v31 = vadd.f32 %v2393_v41, %v2272_v50 }
 0x39c   :  { %v2434_v19 = vadd.f32 %v2393_v41, %v2273_v40 }
 0x39d   :  { %v2411_v5 = vadd.f32 %v3660_v55, %v2250_v46  ;;  %v2412_v22 = vadd.f32 %v3660_v55, %v2251_v49  ;;  %2473 = vst [vmem:[%s3898_s5 + $0x130] sm:$0xff] %v2433_v31  ;;  %v3953_v55 = vld [vmem:[#allocation9_spill] sm:$0xff] }
 0x39e   :  { %2474 = vst [vmem:[%s3898_s5 + $0x138] sm:$0xff] %v2434_v19  ;;  %v2187_v11 = vpop.permute.xlu1 %2186 }
 0x39f   :  { %2451 = vst [vmem:[%s3898_s5 + $0x80] sm:$0xff] %v2411_v5  ;;  %2452 = vst [vmem:[%s3898_s5 + $0x88] sm:$0xff] %v2412_v22  ;;  %v2254_v7 = vmul.f32 %v2187_v11, %v3952_v17  ;;  %v2255_v33 = vmul.f32 %v2187_v11, %v3953_v55 }
 0x3a1   :  { %v2415_v58 = vadd.f32 %v3662_v53, %v2254_v7  ;;  %v2416_v35 = vadd.f32 %v3662_v53, %v2255_v33  ;;  %v3956_v53 = vld [vmem:[#allocation14_spill] sm:$0xff] }
 0x3a2   :  { %v2197_v51 = vpop.permute.xlu1 %2196 }
 0x3a3   :  { %2455 = vst [vmem:[%s3898_s5 + $0xa0] sm:$0xff] %v2415_v58  ;;  %2456 = vst [vmem:[%s3898_s5 + $0xa8] sm:$0xff] %v2416_v35  ;;  %v2258_v59 = vmul.f32 %v2197_v51, %v3954_v42  ;;  %v2259_v57 = vmul.f32 %v2197_v51, %v3955_v38 }
 0x3a5   :  { %v2419_v34 = vadd.f32 %v3664_v13, %v2258_v59  ;;  %v2420_v2 = vadd.f32 %v3664_v13, %v2259_v57  ;;  %v3958_v13 = vld [vmem:[#allocation17_spill] sm:$0xff] }
 0x3a6   :  { %v2207_v8 = vpop.permute.xlu1 %2206 }
 0x3a7   :  { %2459 = vst [vmem:[%s3898_s5 + $0xc0] sm:$0xff] %v2419_v34  ;;  %2460 = vst [vmem:[%s3898_s5 + $0xc8] sm:$0xff] %v2420_v2  ;;  %v2262_v63 = vmul.f32 %v2207_v8, %v3956_v53  ;;  %v2263_v61 = vmul.f32 %v2207_v8, %v3957_v0 }
 0x3a9   :  { %v2423_v43 = vadd.f32 %v3699_v9, %v2262_v63  ;;  %v2424_v26 = vadd.f32 %v3699_v9, %v2263_v61  ;;  %v3960_v9 = vld [vmem:[#allocation21_spill] sm:$0xff] }
 0x3aa   :  { %v2217_v27 = vpop.permute.xlu1 %2216 }
 0x3ab   :  { %2463 = vst [vmem:[%s3898_s5 + $0xe0] sm:$0xff] %v2423_v43  ;;  %2464 = vst [vmem:[%s3898_s5 + $0xe8] sm:$0xff] %v2424_v26  ;;  %v2266_v25 = vmul.f32 %v2217_v27, %v3958_v13  ;;  %v2267_v29 = vmul.f32 %v2217_v27, %v3959_v14 }
 0x3ad   :  { %v2427_v6 = vadd.f32 %v3703_v24, %v2266_v25  ;;  %v2428_v54 = vadd.f32 %v3703_v24, %v2267_v29 }
 0x3ae   :  { %v2227_v60 = vpop.permute.xlu1 %2226 }
 0x3af   :  { %2467 = vst [vmem:[%s3898_s5 + $0x100] sm:$0xff] %v2427_v6  ;;  %2468 = vst [vmem:[%s3898_s5 + $0x108] sm:$0xff] %v2428_v54  ;;  %v2270_v62 = vmul.f32 %v2227_v60, %v3960_v9  ;;  %v2271_v15 = vmul.f32 %v2227_v60, %v3961_v28 }
 0x3b2   :  { %v2388_v1 = vpop.permute.xlu1 %2387 }
 0x3b3   :  { %v2431_v52 = vadd.f32 %v2388_v1, %v2270_v62  ;;  %v2432_v16 = vadd.f32 %v2388_v1, %v2271_v15 }
 0x3b5   :  { %2471 = vst [vmem:[%s3898_s5 + $0x120] sm:$0xff] %v2431_v52  ;;  %2472 = vst [vmem:[%s3898_s5 + $0x128] sm:$0xff] %v2432_v16 }

</bundles_post_ra>
